<compile_context>
chip_gen: v7x
topology: tpu7x:2x2x1
jax: 0.10.0
libtpu: 0.0.40
codegen_flags: <defaults>
</compile_context>

<pallas_src>
import functools

import jax
import jax.numpy as jnp
from jax.experimental import pallas as pl
from jax.experimental.pallas import tpu as pltpu


# ----------------------------------------------------------------------------- kernels

def _ffw_kernel_resident(x_ref, w1_ref, b1_ref, w2_ref, b2_ref, o_ref):
    """Fully-resident weights: o = relu(x @ W1 + b1) @ W2 + b2 for one token tile."""
    x = x_ref[...].astype(w1_ref.dtype)            # in-kernel downcast (hidden under MXU)
    h = jnp.dot(x, w1_ref[...], preferred_element_type=jnp.float32)
    h = jnp.maximum(h + b1_ref[...], 0.0)          # f32 bias + ReLU on the accumulator
    o = jnp.dot(h.astype(w2_ref.dtype), w2_ref[...],
                preferred_element_type=jnp.float32)
    # TODO(synk): training-mode nn.Dropout(p=0.1) would be fused here via
    # pltpu.prng_seed + pltpu.prng_random_bits on the f32 accumulator; the PyTorch
    # module in eval mode is an identity, which is what we implement.
    o_ref[...] = (o + b2_ref[...]).astype(o_ref.dtype)


def _ffw_kernel_ktiled(x_ref, w1_ref, b1_ref, w2_ref, b2_ref, o_ref, acc_ref):
    """Hidden-axis tiled: accumulate partial second matmul over H slices."""
    k = pl.program_id(1)

    @pl.when(k == 0)
    def _():
        acc_ref[...] = jnp.zeros_like(acc_ref)

    x = x_ref[...].astype(w1_ref.dtype)
    h = jnp.dot(x, w1_ref[...], preferred_element_type=jnp.float32)   # (tm, th)
    h = jnp.maximum(h + b1_ref[...], 0.0)                             # ReLU exact per slice
    acc_ref[...] += jnp.dot(h.astype(w2_ref.dtype), w2_ref[...],
                            preferred_element_type=jnp.float32)

    @pl.when(k == pl.num_programs(1) - 1)
    def _():
        o_ref[...] = (acc_ref[...] + b2_ref[...]).astype(o_ref.dtype)


# ----------------------------------------------------------------------------- helpers

def _cdiv(a, b):
    return (a + b - 1) // b


def _round_up(x, m):
    return ((x + m - 1) // m) * m


@functools.lru_cache(maxsize=1)
def _vmem_limit_bytes():
    """Scoped VMEM limit: ~75% of physical per-core VMEM (headroom for Mosaic scratch)."""
    try:
        cap = pltpu.get_tpu_info().vmem_capacity_bytes
    except Exception:
        cap = 64 * 1024 * 1024                     # conservative fallback (v7x-sized)
    return int(cap * 3 // 4)                       # ~96 MiB v5e/v6e, ~48 MiB v7x


def _pick_th(E, H, tm, xbytes, cbytes, obytes, vmem_limit):
    """Largest hidden-axis tile (divisor of H, 128-aligned) whose VMEM plan fits."""
    budget = int(vmem_limit * 0.7)

    def fits(th):
        resident = th >= H
        wbuf = 1 if resident else 2                # streamed weight slices double-buffer
        vmem = (2 * E * th * cbytes * wbuf          # W1 slice + W2 slice
                + (th * wbuf + E) * 4               # b1 slice, b2 (f32)
                + 2 * tm * E * (xbytes + obytes)    # double-buffered x / out tiles
                + (0 if resident else tm * E * 4)   # f32 accumulator scratch
                + tm * th * 4)                      # f32 hidden intermediate
        return vmem <= budget

    th = H
    while th > 128:
        if fits(th):
            return th
        nxt = th // 2
        if H % nxt != 0 or nxt % 128 != 0:
            break
        th = nxt
    return th


# ----------------------------------------------------------------------------- wrapper

@functools.partial(jax.jit, static_argnames=("tm", "th"))
def feed_forward(embeddings, w1, b1, w2, b2, *, tm=512, th=None):
    """Eval-mode FeedForward: (B, T, E) -> (B, T, E);  y = relu(x@W1 + b1)@W2 + b2.

    Weights should be pre-cast (once, outside this call) to the desired MXU compute
    dtype (e.g. bfloat16); x is cast per-tile inside the kernel.
    """
    B, T, E = embeddings.shape
    H = w1.shape[1]                                # 4 * n_embed
    out_dtype = embeddings.dtype
    M = B * T

    xbytes = jnp.dtype(embeddings.dtype).itemsize
    cbytes = jnp.dtype(w1.dtype).itemsize
    obytes = jnp.dtype(out_dtype).itemsize

    # Row tile: 128-aligned, capped so the token grid keeps >= ~4 steps when M allows
    # (shards across both v7x TensorCores and leaves steps to pipeline behind).
    tm = max(128, (int(tm) // 128) * 128)
    tm = min(tm, _round_up(_cdiv(M, 4), 128))
    grid_m = _cdiv(M, tm)

    vmem_limit = _vmem_limit_bytes()
    if th is None:
        th = _pick_th(E, H, tm, xbytes, cbytes, obytes, vmem_limit)
    if th < H and (H % th != 0 or th % 128 != 0):
        raise ValueError(f"th={th} must be a 128-aligned divisor of H={H}")

    x2d = embeddings.reshape(M, E)                 # no pad, no cast
    b1_2d = b1.reshape(1, H).astype(jnp.float32)
    b2_2d = b2.reshape(1, E).astype(jnp.float32)

    if th >= H:
        # Fully resident weights: 1-D parallel token grid.
        grid = (grid_m,)
        in_specs = [
            pl.BlockSpec((tm, E), lambda i: (i, 0)),                                 # x tile
            pl.BlockSpec((E, H), lambda i: (0, 0), pipeline_mode=pl.Buffered(1)),    # W1
            pl.BlockSpec((1, H), lambda i: (0, 0), pipeline_mode=pl.Buffered(1)),    # b1
            pl.BlockSpec((H, E), lambda i: (0, 0), pipeline_mode=pl.Buffered(1)),    # W2
            pl.BlockSpec((1, E), lambda i: (0, 0), pipeline_mode=pl.Buffered(1)),    # b2
        ]
        out_specs = pl.BlockSpec((tm, E), lambda i: (i, 0))
        scratch = []
        kernel = _ffw_kernel_resident
        semantics = ("parallel",)
        weight_bytes = 2 * E * H * cbytes          # weights read once
    else:
        # Hidden-axis tiling for weights that don't fit resident (token outer, H inner).
        grid = (grid_m, H // th)
        in_specs = [
            pl.BlockSpec((tm, E), lambda i, k: (i, 0)),                              # x tile
            pl.BlockSpec((E, th), lambda i, k: (0, k)),                              # W1 slice
            pl.BlockSpec((1, th), lambda i, k: (0, k)),                              # b1 slice
            pl.BlockSpec((th, E), lambda i, k: (k, 0)),                              # W2 slice
            pl.BlockSpec((1, E), lambda i, k: (0, 0), pipeline_mode=pl.Buffered(1)), # b2
        ]
        out_specs = pl.BlockSpec((tm, E), lambda i, k: (i, 0))
        scratch = [pltpu.VMEM((tm, E), jnp.float32)]
        kernel = _ffw_kernel_ktiled
        semantics = ("parallel", "arbitrary")
        weight_bytes = grid_m * 2 * E * H * cbytes  # weights re-streamed per token tile

    cost = pl.CostEstimate(
        flops=4 * M * E * H,                        # two matmuls, 2 flops/MAC
        transcendentals=0,
        bytes_accessed=(M * E * (xbytes + obytes)   # x in, out
                        + weight_bytes              # consistent with chosen loop order
                        + (H + E) * 4),             # f32 biases
    )

    out2d = pl.pallas_call(
        kernel,
        out_shape=jax.ShapeDtypeStruct((M, E), out_dtype),
        grid_spec=pltpu.PrefetchScalarGridSpec(
            num_scalar_prefetch=0,
            grid=grid,
            in_specs=in_specs,
            out_specs=out_specs,
            scratch_shapes=scratch,
        ),
        compiler_params=pltpu.CompilerParams(
            dimension_semantics=semantics,
            vmem_limit_bytes=vmem_limit,
        ),
        cost_estimate=cost,
    )(x2d, w1, b1_2d, w2, b2_2d)

    return out2d.reshape(B, T, E)


# ----------------------------------------------------------------------------- params

def init_params(key, n_embed, dtype=jnp.float32):
    """Deterministic init mimicking nn.Linear's U(-1/sqrt(fan_in), 1/sqrt(fan_in))."""
    hidden = 4 * n_embed
    k1, k2, k3, k4 = jax.random.split(key, 4)
    lim1 = 1.0 / (n_embed ** 0.5)
    lim2 = 1.0 / (hidden ** 0.5)
    w1 = jax.random.uniform(k1, (n_embed, hidden), dtype, -lim1, lim1)
    b1 = jax.random.uniform(k2, (hidden,), dtype, -lim1, lim1)
    w2 = jax.random.uniform(k3, (hidden, n_embed), dtype, -lim2, lim2)
    b2 = jax.random.uniform(k4, (n_embed,), dtype, -lim2, lim2)
    return w1, b1, w2, b2


if __name__ == "__main__":
    key = jax.random.PRNGKey(0)
    k_in, k_par = jax.random.split(key)

    # Small but MXU-friendly config: E / H multiples of 256 (full-width v6e/v7x MXU tiles).
    batch, seq, n_embed = 2, 8, 256
    hidden = 4 * n_embed
    x = jax.random.normal(k_in, (batch, seq, n_embed), jnp.float32)
    w1, b1, w2, b2 = init_params(k_par, n_embed)

    # Pure-JAX reference (eval-mode dropout == identity).
    ref = jnp.maximum(x.reshape(-1, n_embed) @ w1 + b1, 0.0) @ w2 + b2
    ref = ref.reshape(batch, seq, n_embed)

    # 1) f32 weights -> f32 MXU path: near-exact check of the resident-weight kernel.
    out_f32 = jax.block_until_ready(feed_forward(x, w1, b1, w2, b2))
    assert out_f32.shape == (batch, seq, n_embed)
    assert jnp.allclose(out_f32, ref, atol=2e-3, rtol=2e-3)

    # 2) Fast path: weights pre-cast to bf16 ONCE outside the kernel (f32 accumulation).
    w1c, w2c = w1.astype(jnp.bfloat16), w2.astype(jnp.bfloat16)
    out_bf16 = jax.block_until_ready(feed_forward(x, w1c, b1, w2c, b2))
    assert out_bf16.shape == (batch, seq, n_embed)
    assert jnp.allclose(out_bf16, ref, atol=5e-2, rtol=5e-2)

    # 3) Hidden-axis (K-)tiled path forced with th < H, on a ragged token count
    #    (M = 14 not a multiple of the row tile -> exercises the no-padding edge block).
    x_r = x[:, :7, :]
    ref_r = ref[:, :7, :]
    out_kt = jax.block_until_ready(feed_forward(x_r, w1c, b1, w2c, b2, th=hidden // 4))
    assert out_kt.shape == (batch, 7, n_embed)
    assert jnp.allclose(out_kt, ref_r, atol=5e-2, rtol=5e-2)

    print("KERNEL_OK")
</pallas_src>

<mosaic_0001>
module attributes {stable_mosaic.version = 11 : i64} {
  func.func @_ffw_kernel_resident(%arg0: i32, %arg1: memref<128x256xf32, #tpu.memory_space<vmem>>, %arg2: memref<256x1024xf32, #tpu.memory_space<vmem>>, %arg3: memref<1x1024xf32, #tpu.memory_space<vmem>>, %arg4: memref<1024x256xf32, #tpu.memory_space<vmem>>, %arg5: memref<1x256xf32, #tpu.memory_space<vmem>>, %arg6: memref<128x256xf32, #tpu.memory_space<vmem>>) attributes {dimension_semantics = [#tpu.dimension_semantics<parallel>], iteration_bounds = array<i64: 1>, scalar_prefetch = 0 : i64, scratch_operands = 0 : i64, tpu.core_type = #tpu.core_type<tc>, window_params = [{transform_indices = @transform_0, window_bounds = array<i64: 128, 256>}, {pipeline_mode = #tpu.pipeline_mode<synchronous>, transform_indices = @transform_1, window_bounds = array<i64: 256, 1024>}, {pipeline_mode = #tpu.pipeline_mode<synchronous>, transform_indices = @transform_2, window_bounds = array<i64: 1, 1024>}, {pipeline_mode = #tpu.pipeline_mode<synchronous>, transform_indices = @transform_3, window_bounds = array<i64: 1024, 256>}, {pipeline_mode = #tpu.pipeline_mode<synchronous>, transform_indices = @transform_4, window_bounds = array<i64: 1, 256>}, {transform_indices = @transform_5, window_bounds = array<i64: 128, 256>}]} {
    %c0 = arith.constant 0 : index
    %c0_0 = arith.constant 0 : index
    %0 = vector.load %arg1[%c0, %c0_0] : memref<128x256xf32, #tpu.memory_space<vmem>>, vector<128x256xf32>
    %c0_1 = arith.constant 0 : index
    %c0_2 = arith.constant 0 : index
    %1 = vector.load %arg2[%c0_1, %c0_2] : memref<256x1024xf32, #tpu.memory_space<vmem>>, vector<256x1024xf32>
    %cst = arith.constant dense<0.000000e+00> : vector<128x1024xf32>
    %2 = tpu.matmul %0, %1, %cst {dimension_numbers = #tpu.dot_dimension_numbers<[1], [0], [0], [1], [0, 0, 1, 1], [], []>} : vector<128x256xf32>, vector<256x1024xf32>, vector<128x1024xf32> -> vector<128x1024xf32>
    %c0_3 = arith.constant 0 : index
    %c0_4 = arith.constant 0 : index
    %3 = vector.load %arg3[%c0_3, %c0_4] : memref<1x1024xf32, #tpu.memory_space<vmem>>, vector<1x1024xf32>
    %4 = vector.broadcast %3 : vector<1x1024xf32> to vector<128x1024xf32>
    %5 = arith.addf %2, %4 : vector<128x1024xf32>
    %cst_5 = arith.constant 0.000000e+00 : f32
    %6 = vector.broadcast %cst_5 : f32 to vector<128x1024xf32>
    %7 = arith.maximumf %5, %6 : vector<128x1024xf32>
    %c0_6 = arith.constant 0 : index
    %c0_7 = arith.constant 0 : index
    %8 = vector.load %arg4[%c0_6, %c0_7] : memref<1024x256xf32, #tpu.memory_space<vmem>>, vector<1024x256xf32>
    %cst_8 = arith.constant dense<0.000000e+00> : vector<128x256xf32>
    %9 = tpu.matmul %7, %8, %cst_8 {dimension_numbers = #tpu.dot_dimension_numbers<[1], [0], [0], [1], [0, 0, 1, 1], [], []>} : vector<128x1024xf32>, vector<1024x256xf32>, vector<128x256xf32> -> vector<128x256xf32>
    %c0_9 = arith.constant 0 : index
    %c0_10 = arith.constant 0 : index
    %10 = vector.load %arg5[%c0_9, %c0_10] : memref<1x256xf32, #tpu.memory_space<vmem>>, vector<1x256xf32>
    %11 = vector.broadcast %10 : vector<1x256xf32> to vector<128x256xf32>
    %12 = arith.addf %9, %11 : vector<128x256xf32>
    %c0_11 = arith.constant 0 : index
    %c0_12 = arith.constant 0 : index
    %13 = vector.load %arg6[%c0_11, %c0_12] : memref<128x256xf32, #tpu.memory_space<vmem>>, vector<128x256xf32>
    tpu.vector_store %arg6[%c0_11, %c0_12], %12 {strides = array<i32>} : memref<128x256xf32, #tpu.memory_space<vmem>>, vector<128x256xf32>,
    return
  }
  func.func @transform_0(%arg0: i32) -> (i32, i32) {
    %c0_i32 = arith.constant 0 : i32
    %c0_i32_0 = arith.constant 0 : i32
    return %arg0, %c0_i32 : i32, i32
  }
  func.func @transform_1(%arg0: i32) -> (i32, i32) {
    %c0_i32 = arith.constant 0 : i32
    %c0_i32_0 = arith.constant 0 : i32
    %c0_i32_1 = arith.constant 0 : i32
    return %c0_i32, %c0_i32_0 : i32, i32
  }
  func.func @transform_2(%arg0: i32) -> (i32, i32) {
    %c0_i32 = arith.constant 0 : i32
    %c0_i32_0 = arith.constant 0 : i32
    %c0_i32_1 = arith.constant 0 : i32
    return %c0_i32, %c0_i32_0 : i32, i32
  }
  func.func @transform_3(%arg0: i32) -> (i32, i32) {
    %c0_i32 = arith.constant 0 : i32
    %c0_i32_0 = arith.constant 0 : i32
    %c0_i32_1 = arith.constant 0 : i32
    return %c0_i32, %c0_i32_0 : i32, i32
  }
  func.func @transform_4(%arg0: i32) -> (i32, i32) {
    %c0_i32 = arith.constant 0 : i32
    %c0_i32_0 = arith.constant 0 : i32
    %c0_i32_1 = arith.constant 0 : i32
    return %c0_i32, %c0_i32_0 : i32, i32
  }
  func.func @transform_5(%arg0: i32) -> (i32, i32) {
    %c0_i32 = arith.constant 0 : i32
    %c0_i32_0 = arith.constant 0 : i32
    return %arg0, %c0_i32 : i32, i32
  }
}

</mosaic_0001>

<bundles_post_ra>
// kernel: feed_forward.1
= control target key start
LH: loop header
LB: loop body
LE: loop exit
PB: predicated region body
PF: predicated region fallthrough
CT: control target
= control target key end

     0   :  { %10 = vsyncpa [#allocation3], 0  ;;  %s3378_s0 = inlined_call_operand.hbm [shape: f32[16,256], index: 0, kind: input, shape index: {}]   ;;  %s3379_s1 = inlined_call_operand.hbm [shape: f32[256,1024], index: 1, kind: input, shape index: {}]   ;;  %s3380_s2 = inlined_call_operand.vmem [shape: f32[1,1024], index: 2, kind: input, shape index: {}]   ;;  %s3381_s3 = inlined_call_operand.hbm [shape: f32[1024,256], index: 3, kind: input, shape index: {}]   ;;  %s3382_s4 = inlined_call_operand.vmem [shape: f32[1,256], index: 4, kind: input, shape index: {}]   ;;  %s3383_s5 = inlined_call_operand.hbm [shape: f32[16,256], index: 5, kind: output, shape index: {}]  }
   0x1   :  { %11 = vsyncpa [#allocation6], 0 }
   0x2   :  { %12 = vsyncpa [#allocation4], 0 }
   0x3   :  { %17 = vsyncadd [#allocation3], 3584  ;;  %s2901_s18 = smov [#allocation5]   ;;  %s2807_s22 = scalar_lea.hbm %s3379_s1, 32768 }
   0x4   :  { %s30_s19 = sshll.u32 %s2901_s18, 4  ;;  %p2808_p0 = scmp.ne.s32.totalorder %s3379_s1, %s2807_s22  ;;  %s31_s19 = int_to_ptr.vmem [resolvable:$true] %s30_s19 }
   0x5   :  { %p2811_p1 = scmp.lt.u32.totalorder %s2807_s22, %s3379_s1 }
   0x7   :  { %p2813_p2 = pnand %p2811_p1, %p2808_p0 }
   0x9   :  { %2816 = shalt.err (!%p2813_p2)
}
   0xa   :  { %s2817_s27 = scalar_lea.vmem %s31_s19, 32768  ;;  %p2822_p4 = scmp.lt.s32.totalorder %s31_s19, %s31_s19 }
   0xb   :  { %p2818_p3 = scmp.ne.s32.totalorder %s31_s19, %s2817_s27  ;;  %p2823_p5 = scmp.lt.s32.totalorder %s2817_s27, %s2817_s27 }
   0xd   :  { %p2824_p6 = por %p2823_p5, %p2822_p4 }
   0xf   :  { %p2825_p7 = pnand %p2824_p6, %p2818_p3 }
  0x11   :  { %2828 = shalt.err (!%p2825_p7)
}
  0x12   :  { %s2902_s28 = smov 1024   ;;  %s2903_s29 = smov 64  }
  0x13   :  { %36 = dma.hbm_to_vmem [thread:$0]  %s3379_s1, 32768, %s31_s19, [#allocation6], %s2902_s28, %s2902_s28, %s2903_s29  }
  0x14   :  { %s2904_s7 = smov [#allocation2]   ;;  %s2829_s11 = scalar_lea.hbm %s3378_s0, 512 }
  0x15   :  { %s18_s8 = sshll.u32 %s2904_s7, 4  ;;  %p2830_p8 = scmp.ne.s32.totalorder %s3378_s0, %s2829_s11  ;;  %s19_s8 = int_to_ptr.vmem [resolvable:$true] %s18_s8 }
  0x16   :  { %p2833_p9 = scmp.lt.u32.totalorder %s2829_s11, %s3378_s0 }
  0x18   :  { %p2835_p10 = pnand %p2833_p9, %p2830_p8 }
  0x1a   :  { %2838 = shalt.err (!%p2835_p10)
}
  0x1b   :  { %s2839_s16 = scalar_lea.vmem %s19_s8, 512  ;;  %s2843_s1 = scalar_lea.vmem %s19_s8, 4096 }
  0x1c   :  { %p2840_p11 = scmp.ne.s32.totalorder %s19_s8, %s2839_s16  ;;  %p2844_p12 = scmp.lt.s32.totalorder %s19_s8, %s19_s8 }
  0x1d   :  { %p2845_p13 = scmp.lt.s32.totalorder %s2843_s1, %s2839_s16 }
  0x1f   :  { %p2846_p0 = por %p2845_p13, %p2844_p12 }
  0x21   :  { %p2847_p1 = pnand %p2846_p0, %p2840_p11 }
  0x23   :  { %2850 = shalt.err (!%p2847_p1)
}
  0x24   :  { %s2905_s17 = smov 256   ;;  %s2906_s18 = smov 16  }
  0x25   :  { %24 = dma.hbm_to_vmem [thread:$0]  %s3378_s0, 512, %s19_s8, [#allocation3], %s2905_s17, %s2905_s17, %s2906_s18  }
  0x26   :  { %s2907_s21 = smov [#allocation7]   ;;  %s2851_s25 = scalar_lea.hbm %s3381_s3, 32768 }
  0x27   :  { %s44_s22 = sshll.u32 %s2907_s21, 4  ;;  %p2852_p2 = scmp.ne.s32.totalorder %s3381_s3, %s2851_s25  ;;  %s45_s22 = int_to_ptr.vmem [resolvable:$true] %s44_s22 }
  0x28   :  { %p2855_p3 = scmp.lt.u32.totalorder %s2851_s25, %s3381_s3 }
  0x2a   :  { %p2857_p4 = pnand %p2855_p3, %p2852_p2 }
  0x2c   :  { %2860 = shalt.err (!%p2857_p4)
}
  0x2d   :  { %s2861_s30 = scalar_lea.vmem %s45_s22, 32768  ;;  %p2866_p6 = scmp.lt.s32.totalorder %s45_s22, %s45_s22 }
  0x2e   :  { %p2862_p5 = scmp.ne.s32.totalorder %s45_s22, %s2861_s30  ;;  %p2867_p7 = scmp.lt.s32.totalorder %s2861_s30, %s2861_s30 }
  0x30   :  { %p2868_p8 = por %p2867_p7, %p2866_p6 }
  0x32   :  { %p2869_p9 = pnand %p2868_p8, %p2862_p5 }
  0x34   :  { %2872 = shalt.err (!%p2869_p9)
}
  0x35   :  { %50 = dma.hbm_to_vmem [thread:$0]  %s3381_s3, 32768, %s45_s22, [#allocation6], %s2905_s17, %s2905_s17, %s2906_s18  }
  0x36   :  { %2895 = dma.done.wait [#allocation3], 4096  }
  0x37   :  { %2896 = vsyncadd [#allocation3], 4294963200 }
  0x38   :  { %2897 = dma.done.wait [#allocation6], 65536  }
  0x39   :  { %2898 = vsyncadd [#allocation6], 4294901760  ;;  %v95_v0 = vld [vmem:[#allocation5 + $0x8] sm:$0xff]  ;;  %v94_v2 = vld [vmem:[#allocation5] sm:$0xff] }
  0x3a   :  { %v103_v1 = vld [vmem:[#allocation5 + $0x48] sm:$0xff]  ;;  %v102_v4 = vld [vmem:[#allocation5 + $0x40] sm:$0xff] }
  0x3b   :  { %v2126_v3 = vpack.c.bf16 %v103_v1, %v95_v0  ;;  %v111_v5 = vld [vmem:[#allocation5 + $0x88] sm:$0xff]  ;;  %v2128_v7 = vpack.c.bf16 %v102_v4, %v94_v2  ;;  %v110_v9 = vld [vmem:[#allocation5 + $0x80] sm:$0xff] }
  0x3c   :  { %v119_v6 = vld [vmem:[#allocation5 + $0xc8] sm:$0xff]  ;;  %v118_v10 = vld [vmem:[#allocation5 + $0xc0] sm:$0xff] }
  0x3d   :  { %v2130_v8 = vpack.c.bf16 %v119_v6, %v111_v5  ;;  %v127_v11 = vld [vmem:[#allocation5 + $0x108] sm:$0xff]  ;;  %2127 = vmatprep.subr.bf16.mxu1 %v2126_v3  ;;  %v2132_v13 = vpack.c.bf16 %v118_v10, %v110_v9  ;;  %v126_v15 = vld [vmem:[#allocation5 + $0x100] sm:$0xff] }
  0x3e   :  { %v135_v12 = vld [vmem:[#allocation5 + $0x148] sm:$0xff]  ;;  %2129 = vmatpush1.bf16.msra.mxu1 %v2128_v7  ;;  %v134_v16 = vld [vmem:[#allocation5 + $0x140] sm:$0xff] }
  0x3f   :  { %2131 = vmatprep.subr.bf16.mxu1 %v2130_v8  ;;  %v2134_v14 = vpack.c.bf16 %v135_v12, %v127_v11  ;;  %v143_v17 = vld [vmem:[#allocation5 + $0x188] sm:$0xff]  ;;  %v2136_v19 = vpack.c.bf16 %v134_v16, %v126_v15  ;;  %v142_v21 = vld [vmem:[#allocation5 + $0x180] sm:$0xff] }
  0x40   :  { %v151_v18 = vld [vmem:[#allocation5 + $0x1c8] sm:$0xff]  ;;  %v150_v22 = vld [vmem:[#allocation5 + $0x1c0] sm:$0xff] }
  0x41   :  { %v2138_v20 = vpack.c.bf16 %v151_v18, %v143_v17  ;;  %v159_v23 = vld [vmem:[#allocation5 + $0x208] sm:$0xff]  ;;  %v2140_v25 = vpack.c.bf16 %v150_v22, %v142_v21  ;;  %v158_v27 = vld [vmem:[#allocation5 + $0x200] sm:$0xff] }
  0x42   :  { %2133 = vmatpush1.bf16.msra.mxu1 %v2132_v13  ;;  %v167_v24 = vld [vmem:[#allocation5 + $0x248] sm:$0xff]  ;;  %v166_v28 = vld [vmem:[#allocation5 + $0x240] sm:$0xff] }
  0x43   :  { %2135 = vmatprep.subr.bf16.mxu1 %v2134_v14  ;;  %v2142_v26 = vpack.c.bf16 %v167_v24, %v159_v23  ;;  %v175_v29 = vld [vmem:[#allocation5 + $0x288] sm:$0xff]  ;;  %v2144_v31 = vpack.c.bf16 %v166_v28, %v158_v27  ;;  %v174_v33 = vld [vmem:[#allocation5 + $0x280] sm:$0xff] }
  0x44   :  { %v183_v30 = vld [vmem:[#allocation5 + $0x2c8] sm:$0xff]  ;;  %v182_v34 = vld [vmem:[#allocation5 + $0x2c0] sm:$0xff] }
  0x45   :  { %v2146_v32 = vpack.c.bf16 %v183_v30, %v175_v29  ;;  %v191_v35 = vld [vmem:[#allocation5 + $0x308] sm:$0xff]  ;;  %v2148_v37 = vpack.c.bf16 %v182_v34, %v174_v33  ;;  %v190_v39 = vld [vmem:[#allocation5 + $0x300] sm:$0xff]  ;;  %v105_v33 = vld [vmem:[#allocation5 + $0x58] sm:$0xff] }
  0x46   :  { %2137 = vmatpush1.bf16.msra.mxu1 %v2136_v19  ;;  %v199_v36 = vld [vmem:[#allocation5 + $0x348] sm:$0xff]  ;;  %v198_v40 = vld [vmem:[#allocation5 + $0x340] sm:$0xff] }
  0x47   :  { %2139 = vmatprep.subr.bf16.mxu1 %v2138_v20  ;;  %v2150_v38 = vpack.c.bf16 %v199_v36, %v191_v35  ;;  %v2981_v41 = vld [vmem:[#allocation2 + $0x8] sm:$0xff]  ;;  %v2152_v44 = vpack.c.bf16 %v198_v40, %v190_v39  ;;  %v206_v46 = vld [vmem:[#allocation5 + $0x380] sm:$0xff]  ;;  %v96_v36 = vld [vmem:[#allocation5 + $0x10] sm:$0xff] }
  0x48   :  { %v207_v42 = vld [vmem:[#allocation5 + $0x388] sm:$0xff]  ;;  %456 = vmatprep.mubr.f32.mxu1 %v2981_v41  ;;  %v214_v47 = vld [vmem:[#allocation5 + $0x3c0] sm:$0xff]  ;;  %v121_v39 = vld [vmem:[#allocation5 + $0xd8] sm:$0xff] }
  0x49   :  { %v215_v43 = vld [vmem:[#allocation5 + $0x3c8] sm:$0xff]  ;;  %v2156_v50 = vpack.c.bf16 %v214_v47, %v206_v46  ;;  %v222_v52 = vld [vmem:[#allocation5 + $0x400] sm:$0xff]  ;;  %v120_v46 = vld [vmem:[#allocation5 + $0xd0] sm:$0xff] }
  0x4a   :  { %2141 = vmatpush1.bf16.msra.mxu1 %v2140_v25  ;;  %v2154_v45 = vpack.c.bf16 %v215_v43, %v207_v42  ;;  %v223_v48 = vld [vmem:[#allocation5 + $0x408] sm:$0xff]  ;;  %v230_v53 = vld [vmem:[#allocation5 + $0x440] sm:$0xff]  ;;  %v2986_v43 = vld [vmem:[#allocation2 + $0x18] sm:$0xff] }
  0x4b   :  { %2143 = vmatprep.subr.bf16.mxu1 %v2142_v26  ;;  %v231_v49 = vld [vmem:[#allocation5 + $0x448] sm:$0xff]  ;;  %v2160_v56 = vpack.c.bf16 %v230_v53, %v222_v52  ;;  %v238_v58 = vld [vmem:[#allocation5 + $0x480] sm:$0xff]  ;;  %v129_v47 = vld [vmem:[#allocation5 + $0x118] sm:$0xff] }
  0x4c   :  { %v2158_v51 = vpack.c.bf16 %v231_v49, %v223_v48  ;;  %v239_v54 = vld [vmem:[#allocation5 + $0x488] sm:$0xff]  ;;  %v246_v59 = vld [vmem:[#allocation5 + $0x4c0] sm:$0xff]  ;;  %v137_v48 = vld [vmem:[#allocation5 + $0x158] sm:$0xff] }
  0x4d   :  { %v247_v55 = vld [vmem:[#allocation5 + $0x4c8] sm:$0xff]  ;;  %v2164_v62 = vpack.c.bf16 %v246_v59, %v238_v58  ;;  %v254_v0 = vld [vmem:[#allocation5 + $0x500] sm:$0xff]  ;;  %v2990_v49 = vld [vmem:[#allocation2 + $0x10] sm:$0xff]  ;;  %v2198_v52 = vpack.c.bf16 %v137_v48, %v129_v47 }
  0x4e   :  { %2145 = vmatpush1.bf16.msra.mxu1 %v2144_v31  ;;  %v2162_v57 = vpack.c.bf16 %v247_v55, %v239_v54  ;;  %v255_v60 = vld [vmem:[#allocation5 + $0x508] sm:$0xff]  ;;  %v262_v1 = vld [vmem:[#allocation5 + $0x540] sm:$0xff]  ;;  %v128_v53 = vld [vmem:[#allocation5 + $0x110] sm:$0xff] }
  0x4f   :  { %2147 = vmatprep.subr.bf16.mxu1 %v2146_v32  ;;  %v263_v61 = vld [vmem:[#allocation5 + $0x548] sm:$0xff]  ;;  %v2168_v4 = vpack.c.bf16 %v262_v1, %v254_v0  ;;  %v270_v6 = vld [vmem:[#allocation5 + $0x580] sm:$0xff]  ;;  %v97_v32 = vld [vmem:[#allocation5 + $0x18] sm:$0xff] }
  0x50   :  { %v2166_v63 = vpack.c.bf16 %v263_v61, %v255_v60  ;;  %v271_v2 = vld [vmem:[#allocation5 + $0x588] sm:$0xff]  ;;  %v278_v7 = vld [vmem:[#allocation5 + $0x5c0] sm:$0xff]  ;;  %v2190_v35 = vpack.c.bf16 %v105_v33, %v97_v32  ;;  %v136_v54 = vld [vmem:[#allocation5 + $0x150] sm:$0xff] }
  0x51   :  { %v279_v3 = vld [vmem:[#allocation5 + $0x5c8] sm:$0xff]  ;;  %v2172_v10 = vpack.c.bf16 %v278_v7, %v270_v6  ;;  %v286_v12 = vld [vmem:[#allocation5 + $0x600] sm:$0xff]  ;;  %v145_v55 = vld [vmem:[#allocation5 + $0x198] sm:$0xff]  ;;  %v2200_v58 = vpack.c.bf16 %v136_v54, %v128_v53 }
  0x52   :  { %2149 = vmatpush1.bf16.msra.mxu1 %v2148_v37  ;;  %v2170_v5 = vpack.c.bf16 %v279_v3, %v271_v2  ;;  %v287_v8 = vld [vmem:[#allocation5 + $0x608] sm:$0xff]  ;;  %v294_v13 = vld [vmem:[#allocation5 + $0x640] sm:$0xff]  ;;  %v104_v37 = vld [vmem:[#allocation5 + $0x50] sm:$0xff] }
  0x53   :  { %2151 = vmatprep.subr.bf16.mxu1 %v2150_v38  ;;  %v295_v9 = vld [vmem:[#allocation5 + $0x648] sm:$0xff]  ;;  %v2176_v16 = vpack.c.bf16 %v294_v13, %v286_v12  ;;  %v302_v18 = vld [vmem:[#allocation5 + $0x680] sm:$0xff]  ;;  %v113_v38 = vld [vmem:[#allocation5 + $0x98] sm:$0xff]  ;;  %v2192_v42 = vpack.c.bf16 %v104_v37, %v96_v36 }
  0x54   :  { %v2174_v11 = vpack.c.bf16 %v295_v9, %v287_v8  ;;  %v303_v14 = vld [vmem:[#allocation5 + $0x688] sm:$0xff]  ;;  %v310_v19 = vld [vmem:[#allocation5 + $0x6c0] sm:$0xff]  ;;  %v2998_v59 = vld [vmem:[#allocation2 + $0x38] sm:$0xff] }
  0x55   :  { %v311_v15 = vld [vmem:[#allocation5 + $0x6c8] sm:$0xff]  ;;  %v2180_v22 = vpack.c.bf16 %v310_v19, %v302_v18  ;;  %v318_v24 = vld [vmem:[#allocation5 + $0x700] sm:$0xff]  ;;  %v144_v61 = vld [vmem:[#allocation5 + $0x190] sm:$0xff] }
  0x56   :  { %2153 = vmatpush1.bf16.msra.mxu1 %v2152_v44  ;;  %v2178_v17 = vpack.c.bf16 %v311_v15, %v303_v14  ;;  %v319_v20 = vld [vmem:[#allocation5 + $0x708] sm:$0xff]  ;;  %v326_v25 = vld [vmem:[#allocation5 + $0x740] sm:$0xff]  ;;  %v2194_v44 = vpack.c.bf16 %v121_v39, %v113_v38  ;;  %v169_v0 = vld [vmem:[#allocation5 + $0x258] sm:$0xff] }
  0x57   :  { %2155 = vmatprep.subr.bf16.mxu1 %v2154_v45  ;;  %v327_v21 = vld [vmem:[#allocation5 + $0x748] sm:$0xff]  ;;  %v2184_v28 = vpack.c.bf16 %v326_v25, %v318_v24  ;;  %v334_v30 = vld [vmem:[#allocation5 + $0x780] sm:$0xff]  ;;  %v112_v45 = vld [vmem:[#allocation5 + $0x90] sm:$0xff] }
  0x58   :  { %v2182_v23 = vpack.c.bf16 %v327_v21, %v319_v20  ;;  %v335_v26 = vld [vmem:[#allocation5 + $0x788] sm:$0xff]  ;;  %v342_v31 = vld [vmem:[#allocation5 + $0x7c0] sm:$0xff]  ;;  %v3002_v1 = vld [vmem:[#allocation2 + $0x30] sm:$0xff] }
  0x59   :  { %v343_v27 = vld [vmem:[#allocation5 + $0x7c8] sm:$0xff]  ;;  %v2188_v34 = vpack.c.bf16 %v342_v31, %v334_v30  ;;  %v2984_v40 = vld [vmem:[#allocation2] sm:$0xff]  ;;  %v168_v6 = vld [vmem:[#allocation5 + $0x250] sm:$0xff] }
  0x5a   :  { %2157 = vmatpush1.bf16.msra.mxu1 %v2156_v50  ;;  %v2186_v29 = vpack.c.bf16 %v343_v27, %v335_v26  ;;  %v2196_v50 = vpack.c.bf16 %v120_v46, %v112_v45  ;;  %v3004_v3 = vld [vmem:[#allocation2 + $0x48] sm:$0xff]  ;;  %v177_v7 = vld [vmem:[#allocation5 + $0x298] sm:$0xff]  ;;  %v3008_v9 = vld [vmem:[#allocation2 + $0x40] sm:$0xff] }
  0x5b   :  { %2159 = vmatprep.subr.bf16.mxu1 %v2158_v51  ;;  %v2992_v51 = vld [vmem:[#allocation2 + $0x28] sm:$0xff]  ;;  %v185_v8 = vld [vmem:[#allocation5 + $0x2d8] sm:$0xff]  ;;  %v176_v13 = vld [vmem:[#allocation5 + $0x290] sm:$0xff] }
  0x5c   :  { %v2210_v12 = vpack.c.bf16 %v185_v8, %v177_v7  ;;  %v184_v14 = vld [vmem:[#allocation5 + $0x2d0] sm:$0xff]  ;;  %v193_v15 = vld [vmem:[#allocation5 + $0x318] sm:$0xff]  ;;  %v3016_v19 = vld [vmem:[#allocation2 + $0x68] sm:$0xff] }
  0x5d   :  { %v2212_v18 = vpack.c.bf16 %v184_v14, %v176_v13  ;;  %v192_v21 = vld [vmem:[#allocation5 + $0x310] sm:$0xff]  ;;  %v217_v24 = vld [vmem:[#allocation5 + $0x3d8] sm:$0xff]  ;;  %v3020_v25 = vld [vmem:[#allocation2 + $0x60] sm:$0xff] }
  0x5e   :  { %2161 = vmatpush1.bf16.msra.mxu1 %v2160_v56  ;;  %v153_v56 = vld [vmem:[#allocation5 + $0x1d8] sm:$0xff]  ;;  %v216_v30 = vld [vmem:[#allocation5 + $0x3d0] sm:$0xff]  ;;  %v1165_v33 = vld [vmem:[#allocation7 + $0x8] sm:$0xff] }
  0x5f   :  { %2163 = vmatprep.subr.bf16.mxu1 %v2162_v57  ;;  %v2996_v57 = vld [vmem:[#allocation2 + $0x20] sm:$0xff]  ;;  %v2202_v60 = vpack.c.bf16 %v153_v56, %v145_v55  ;;  %v3022_v27 = vld [vmem:[#allocation2 + $0x78] sm:$0xff]  ;;  %v1166_v37 = vld [vmem:[#allocation7 + $0x10] sm:$0xff] }
  0x60   :  { %v225_v31 = vld [vmem:[#allocation5 + $0x418] sm:$0xff]  ;;  %v1164_v36 = vld [vmem:[#allocation7] sm:$0xff]  ;;  %v3026_v38 = vld [vmem:[#allocation2 + $0x70] sm:$0xff] }
  0x61   :  { %v233_v32 = vld [vmem:[#allocation5 + $0x458] sm:$0xff]  ;;  %v224_v46 = vld [vmem:[#allocation5 + $0x410] sm:$0xff]  ;;  %v1168_v55 = vld [vmem:[#allocation7 + $0x20] sm:$0xff] }
  0x62   :  { %2165 = vmatpush1.bf16.msra.mxu1 %v2164_v62  ;;  %v152_v62 = vld [vmem:[#allocation5 + $0x1d0] sm:$0xff]  ;;  %v2222_v45 = vpack.c.bf16 %v233_v32, %v225_v31  ;;  %v241_v48 = vld [vmem:[#allocation5 + $0x498] sm:$0xff]  ;;  %v3044_v31 = vld [vmem:[#allocation2 + $0xa0] sm:$0xff] }
  0x63   :  { %2167 = vmatprep.subr.bf16.mxu1 %v2166_v63  ;;  %v161_v63 = vld [vmem:[#allocation5 + $0x218] sm:$0xff]  ;;  %v2204_v2 = vpack.c.bf16 %v152_v62, %v144_v61  ;;  %v232_v47 = vld [vmem:[#allocation5 + $0x450] sm:$0xff] }
  0x64   :  { %v1171_v53 = vld [vmem:[#allocation7 + $0x38] sm:$0xff]  ;;  %v1170_v56 = vld [vmem:[#allocation7 + $0x30] sm:$0xff] }
  0x65   :  { %v3034_v61 = vld [vmem:[#allocation2 + $0x98] sm:$0xff]  ;;  %v2388_v62 = vpack.c.bf16 %v1170_v56, %v1168_v55  ;;  %v3038_v13 = vld [vmem:[#allocation2 + $0x90] sm:$0xff] }
  0x66   :  { %2169 = vmatpush1.bf16.msra.mxu1 %v2168_v4  ;;  %v2206_v4 = vpack.c.bf16 %v169_v0, %v161_v63  ;;  %v240_v0 = vld [vmem:[#allocation5 + $0x490] sm:$0xff]  ;;  %v1175_v7 = vld [vmem:[#allocation7 + $0x58] sm:$0xff] }
  0x67   :  { %2171 = vmatprep.subr.bf16.mxu1 %v2170_v5  ;;  %v160_v5 = vld [vmem:[#allocation5 + $0x210] sm:$0xff] }
  0x6a   :  { %2173 = vmatpush1.bf16.msra.mxu1 %v2172_v10  ;;  %v2208_v10 = vpack.c.bf16 %v168_v6, %v160_v5  ;;  %v265_v5 = vld [vmem:[#allocation5 + $0x558] sm:$0xff]  ;;  %v1173_v6 = vld [vmem:[#allocation7 + $0x48] sm:$0xff] }
  0x6b   :  { %2175 = vmatprep.subr.bf16.mxu1 %v2174_v11  ;;  %v3010_v11 = vld [vmem:[#allocation2 + $0x58] sm:$0xff]  ;;  %v2390_v8 = vpack.c.bf16 %v1175_v7, %v1173_v6  ;;  %v1184_v6 = vld [vmem:[#allocation7 + $0xa0] sm:$0xff]  ;;  %v1186_v7 = vld [vmem:[#allocation7 + $0xb0] sm:$0xff] }
  0x6e   :  { %2177 = vmatpush1.bf16.msra.mxu1 %v2176_v16  ;;  %v201_v16 = vld [vmem:[#allocation5 + $0x358] sm:$0xff] }
  0x6f   :  { %2179 = vmatprep.subr.bf16.mxu1 %v2178_v17  ;;  %v3014_v17 = vld [vmem:[#allocation2 + $0x50] sm:$0xff]  ;;  %v2214_v20 = vpack.c.bf16 %v201_v16, %v193_v15  ;;  %v3040_v15 = vld [vmem:[#allocation2 + $0xa8] sm:$0xff] }
  0x72   :  { %2181 = vmatpush1.bf16.msra.mxu1 %v2180_v22  ;;  %v200_v22 = vld [vmem:[#allocation5 + $0x350] sm:$0xff] }
  0x73   :  { %2183 = vmatprep.subr.bf16.mxu1 %v2182_v23  ;;  %v209_v23 = vld [vmem:[#allocation5 + $0x398] sm:$0xff]  ;;  %v2216_v26 = vpack.c.bf16 %v200_v22, %v192_v21  ;;  %v264_v21 = vld [vmem:[#allocation5 + $0x550] sm:$0xff] }
  0x74   :  { %v273_v22 = vld [vmem:[#allocation5 + $0x598] sm:$0xff] }
  0x76   :  { %2185 = vmatpush1.bf16.msra.mxu1 %v2184_v28  ;;  %v2218_v28 = vpack.c.bf16 %v217_v24, %v209_v23  ;;  %v281_v23 = vld [vmem:[#allocation5 + $0x5d8] sm:$0xff]  ;;  %v1177_v24 = vld [vmem:[#allocation7 + $0x68] sm:$0xff] }
  0x77   :  { %2187 = vmatprep.subr.bf16.mxu1 %v2186_v29  ;;  %v208_v29 = vld [vmem:[#allocation5 + $0x390] sm:$0xff] }
  0x78   :  { %v2220_v39 = vpack.c.bf16 %v216_v30, %v208_v29  ;;  %v1176_v29 = vld [vmem:[#allocation7 + $0x60] sm:$0xff]  ;;  %v1178_v30 = vld [vmem:[#allocation7 + $0x70] sm:$0xff] }
  0x7a   :  { %2189 = vmatpush1.bf16.msra.mxu1 %v2188_v34  ;;  %v1167_v34 = vld [vmem:[#allocation7 + $0x18] sm:$0xff] }
  0x7b   :  { %2191 = vmatprep.subr.bf16.mxu1 %v2190_v35  ;;  %v2382_v35 = vpack.c.bf16 %v1167_v34, %v1165_v33  ;;  %v3046_v33 = vld [vmem:[#allocation2 + $0xb8] sm:$0xff]  ;;  %v2396_v34 = vpack.c.bf16 %v1178_v30, %v1176_v29  ;;  %v1190_v29 = vld [vmem:[#allocation7 + $0xd0] sm:$0xff] }
  0x7c   :  { %v3062_v30 = vld [vmem:[#allocation2 + $0xd0] sm:$0xff] }
  0x7d   :  { %457 = vmatmul.mubr.f32.vlgmr.msra.gmra.mrb[0].mxu1 %v2984_v40  ;;  %2383 = vmatprep.subr.bf16.mxu0 %v2382_v35  ;;  %v2234_v35 = vpack.c.bf16 %v281_v23, %v273_v22  ;;  %v329_v22 = vld [vmem:[#allocation5 + $0x758] sm:$0xff]  ;;  %v1189_v23 = vld [vmem:[#allocation7 + $0xc8] sm:$0xff] }
  0x7e   :  { %2193 = vmatpush1.bf16.msra.mxu1 %v2192_v42  ;;  %462 = vmatprep.mubr.f32.mxu1 %v2986_v43  ;;  %v3028_v42 = vld [vmem:[#allocation2 + $0x88] sm:$0xff] }
  0x7f   :  { %2195 = vmatprep.subr.bf16.mxu1 %v2194_v44  ;;  %v2384_v44 = vpack.c.bf16 %v1166_v37, %v1164_v36  ;;  %v272_v36 = vld [vmem:[#allocation5 + $0x590] sm:$0xff] }
  0x80   :  { %v280_v37 = vld [vmem:[#allocation5 + $0x5d0] sm:$0xff] }
  0x81   :  { %463 = vmatmul.mubr.f32.gmra.mrb[2].mxu1 %v2990_v49  ;;  %2385 = vmatpush1.bf16.msra.mxu0 %v2384_v44  ;;  %v297_v44 = vld [vmem:[#allocation5 + $0x658] sm:$0xff] }
  0x82   :  { %2197 = vmatpush1.bf16.msra.mxu1 %v2196_v50  ;;  %468 = vmatprep.mubr.f32.mxu1 %v2992_v51  ;;  %v249_v50 = vld [vmem:[#allocation5 + $0x4d8] sm:$0xff] }
  0x83   :  { %2199 = vmatprep.subr.bf16.mxu1 %v2198_v52  ;;  %v1169_v52 = vld [vmem:[#allocation7 + $0x28] sm:$0xff]  ;;  %v2226_v63 = vpack.c.bf16 %v249_v50, %v241_v48  ;;  %v1180_v48 = vld [vmem:[#allocation7 + $0x80] sm:$0xff]  ;;  %v1182_v50 = vld [vmem:[#allocation7 + $0x90] sm:$0xff] }
  0x84   :  { %v2386_v54 = vpack.c.bf16 %v1171_v53, %v1169_v52  ;;  %v3050_v52 = vld [vmem:[#allocation2 + $0xb0] sm:$0xff]  ;;  %v2236_v53 = vpack.c.bf16 %v280_v37, %v272_v36  ;;  %v2400_v55 = vpack.c.bf16 %v1182_v50, %v1180_v48  ;;  %v1192_v50 = vld [vmem:[#allocation7 + $0xe0] sm:$0xff] }
  0x85   :  { %469 = vmatmul.mubr.f32.gmra.mrb[4].mxu1 %v2996_v57  ;;  %v320_v37 = vld [vmem:[#allocation5 + $0x710] sm:$0xff] }
  0x86   :  { %2201 = vmatpush1.bf16.msra.mxu1 %v2200_v58  ;;  %474 = vmatprep.mubr.f32.mxu1 %v2998_v59  ;;  %v3032_v58 = vld [vmem:[#allocation2 + $0x80] sm:$0xff] }
  0x87   :  { %2203 = vmatprep.subr.bf16.mxu1 %v2202_v60  ;;  %v2224_v60 = vpack.c.bf16 %v232_v47, %v224_v46  ;;  %2387 = vmatprep.subr.bf16.mxu0 %v2386_v54  ;;  %v1183_v46 = vld [vmem:[#allocation7 + $0x98] sm:$0xff]  ;;  %v3052_v54 = vld [vmem:[#allocation2 + $0xc8] sm:$0xff] }
  0x88   :  { %2389 = vmatpush1.bf16.msra.mxu0 %v2388_v62  ;;  %v296_v62 = vld [vmem:[#allocation5 + $0x650] sm:$0xff] }
  0x89   :  { %475 = vmatmul.mubr.f32.gmra.mrb[6].mxu1 %v3002_v1  ;;  %2391 = vmatprep.subr.bf16.mxu0 %v2390_v8  ;;  %v3056_v8 = vld [vmem:[#allocation2 + $0xc0] sm:$0xff] }
  0x8a   :  { %2205 = vmatpush1.bf16.msra.mxu1 %v2204_v2  ;;  %480 = vmatprep.mubr.f32.mxu1 %v3004_v3  ;;  %v248_v2 = vld [vmem:[#allocation5 + $0x4d0] sm:$0xff] }
  0x8b   :  { %2207 = vmatprep.subr.bf16.mxu1 %v2206_v4  ;;  %v257_v4 = vld [vmem:[#allocation5 + $0x518] sm:$0xff]  ;;  %v2228_v14 = vpack.c.bf16 %v248_v2, %v240_v0  ;;  %v1185_v2 = vld [vmem:[#allocation7 + $0xa8] sm:$0xff] }
  0x8c   :  { %v313_v0 = vld [vmem:[#allocation5 + $0x6d8] sm:$0xff] }
  0x8d   :  { %481 = vmatmul.mubr.f32.gmra.mrb[8].mxu1 %v3008_v9 }
  0x8e   :  { %2209 = vmatpush1.bf16.msra.mxu1 %v2208_v10  ;;  %486 = vmatprep.mubr.f32.mxu1 %v3010_v11  ;;  %v1172_v10 = vld [vmem:[#allocation7 + $0x40] sm:$0xff] }
  0x8f   :  { %2211 = vmatprep.subr.bf16.mxu1 %v2210_v12  ;;  %v1174_v12 = vld [vmem:[#allocation7 + $0x50] sm:$0xff] }
  0x90   :  { %v2392_v16 = vpack.c.bf16 %v1174_v12, %v1172_v10  ;;  %v3058_v12 = vld [vmem:[#allocation2 + $0xd8] sm:$0xff] }
  0x91   :  { %487 = vmatmul.mubr.f32.gmra.mrb[10].mxu1 %v3014_v17 }
  0x92   :  { %2213 = vmatpush1.bf16.msra.mxu1 %v2212_v18  ;;  %492 = vmatprep.mubr.f32.mxu1 %v3016_v19  ;;  %v2230_v18 = vpack.c.bf16 %v265_v5, %v257_v4  ;;  %v1187_v4 = vld [vmem:[#allocation7 + $0xb8] sm:$0xff] }
  0x93   :  { %2215 = vmatprep.subr.bf16.mxu1 %v2214_v20  ;;  %v256_v20 = vld [vmem:[#allocation5 + $0x510] sm:$0xff]  ;;  %2393 = vmatpush1.bf16.msra.mxu0 %v2392_v16  ;;  %v2402_v5 = vpack.c.bf16 %v1187_v4, %v1185_v2  ;;  %v99_v4 = vld [vmem:[#allocation5 + $0x28] sm:$0xff] }
  0x94   :  { %v2232_v32 = vpack.c.bf16 %v264_v21, %v256_v20  ;;  %v312_v20 = vld [vmem:[#allocation5 + $0x6d0] sm:$0xff]  ;;  %v321_v21 = vld [vmem:[#allocation5 + $0x718] sm:$0xff] }
  0x95   :  { %493 = vmatmul.mubr.f32.gmra.mrb[12].mxu1 %v3020_v25  ;;  %v2246_v36 = vpack.c.bf16 %v329_v22, %v321_v21  ;;  %v344_v2 = vld [vmem:[#allocation5 + $0x7d0] sm:$0xff] }
  0x96   :  { %2217 = vmatpush1.bf16.msra.mxu1 %v2216_v26  ;;  %498 = vmatprep.mubr.f32.mxu1 %v3022_v27  ;;  %v1179_v26 = vld [vmem:[#allocation7 + $0x78] sm:$0xff] }
  0x97   :  { %2219 = vmatprep.subr.bf16.mxu1 %v2218_v28  ;;  %v2394_v28 = vpack.c.bf16 %v1179_v26, %v1177_v24  ;;  %v1191_v24 = vld [vmem:[#allocation7 + $0xd8] sm:$0xff] }
  0x98   :  { %v2406_v26 = vpack.c.bf16 %v1191_v24, %v1189_v23  ;;  %v98_v23 = vld [vmem:[#allocation5 + $0x20] sm:$0xff] }
  0x99   :  { %499 = vmatmul.mubr.f32.gmra.mrb[14].mxu1 %v3026_v38  ;;  %2395 = vmatprep.subr.bf16.mxu0 %v2394_v28  ;;  %v1188_v28 = vld [vmem:[#allocation7 + $0xc0] sm:$0xff] }
  0x9a   :  { %2221 = vmatpush1.bf16.msra.mxu1 %v2220_v39  ;;  %504 = vmatprep.mubr.f32.mxu1 %v3028_v42  ;;  %v289_v39 = vld [vmem:[#allocation5 + $0x618] sm:$0xff]  ;;  %v106_v24 = vld [vmem:[#allocation5 + $0x60] sm:$0xff] }
  0x9b   :  { %2223 = vmatprep.subr.bf16.mxu1 %v2222_v45  ;;  %2397 = vmatpush1.bf16.msra.mxu0 %v2396_v34  ;;  %v1181_v45 = vld [vmem:[#allocation7 + $0x88] sm:$0xff]  ;;  %v2238_v56 = vpack.c.bf16 %v297_v44, %v289_v39  ;;  %v328_v39 = vld [vmem:[#allocation5 + $0x750] sm:$0xff]  ;;  %v337_v44 = vld [vmem:[#allocation5 + $0x798] sm:$0xff] }
  0x9c   :  { %v2398_v47 = vpack.c.bf16 %v1183_v46, %v1181_v45  ;;  %v3064_v34 = vld [vmem:[#allocation2 + $0xe8] sm:$0xff]  ;;  %v345_v45 = vld [vmem:[#allocation5 + $0x7d8] sm:$0xff] }
  0x9d   :  { %505 = vmatmul.mubr.f32.gmra.mrb[16].mxu1 %v3032_v58  ;;  %v1193_v46 = vld [vmem:[#allocation7 + $0xe8] sm:$0xff] }
  0x9e   :  { %2225 = vmatpush1.bf16.msra.mxu1 %v2224_v60  ;;  %510 = vmatprep.mubr.f32.mxu1 %v3034_v61  ;;  %v288_v60 = vld [vmem:[#allocation5 + $0x610] sm:$0xff] }
  0x9f   :  { %2227 = vmatprep.subr.bf16.mxu1 %v2226_v63  ;;  %v305_v63 = vld [vmem:[#allocation5 + $0x698] sm:$0xff]  ;;  %2399 = vmatprep.subr.bf16.mxu0 %v2398_v47  ;;  %v2240_v10 = vpack.c.bf16 %v296_v62, %v288_v60 }
  0xa0   :  { %2401 = vmatpush1.bf16.msra.mxu0 %v2400_v55  ;;  %v2242_v16 = vpack.c.bf16 %v313_v0, %v305_v63  ;;  %v1195_v47 = vld [vmem:[#allocation7 + $0xf8] sm:$0xff]  ;;  %v3068_v55 = vld [vmem:[#allocation2 + $0xe0] sm:$0xff]  ;;  %v2250_v63 = vpack.c.bf16 %v345_v45, %v337_v44  ;;  %v336_v0 = vld [vmem:[#allocation5 + $0x790] sm:$0xff] }
  0xa1   :  { %511 = vmatmul.mubr.f32.gmra.mrb[18].mxu1 %v3038_v13  ;;  %2403 = vmatprep.subr.bf16.mxu0 %v2402_v5  ;;  %v2410_v48 = vpack.c.bf16 %v1195_v47, %v1193_v46  ;;  %v3070_v60 = vld [vmem:[#allocation2 + $0xf8] sm:$0xff]  ;;  %v107_v5 = vld [vmem:[#allocation5 + $0x68] sm:$0xff]  ;;  %v114_v46 = vld [vmem:[#allocation5 + $0xa0] sm:$0xff] }
  0xa2   :  { %2229 = vmatpush1.bf16.msra.mxu1 %v2228_v14  ;;  %516 = vmatprep.mubr.f32.mxu1 %v3040_v15  ;;  %v2404_v14 = vpack.c.bf16 %v1186_v7, %v1184_v6  ;;  %v1197_v6 = vld [vmem:[#allocation7 + $0x108] sm:$0xff]  ;;  %v1199_v7 = vld [vmem:[#allocation7 + $0x118] sm:$0xff]  ;;  %v2254_v22 = vpack.c.bf16 %v107_v5, %v99_v4  ;;  %v122_v47 = vld [vmem:[#allocation5 + $0xe0] sm:$0xff] }
  0xa3   :  { %2231 = vmatprep.subr.bf16.mxu1 %v2230_v18  ;;  %v304_v18 = vld [vmem:[#allocation5 + $0x690] sm:$0xff]  ;;  %v130_v5 = vld [vmem:[#allocation5 + $0x120] sm:$0xff] }
  0xa4   :  { %2405 = vmatpush1.bf16.msra.mxu0 %v2404_v14  ;;  %v1196_v14 = vld [vmem:[#allocation7 + $0x100] sm:$0xff] }
  0xa5   :  { %517 = vmatmul.mubr.f32.gmra.mrb[20].mxu1 %v3044_v31  ;;  %2407 = vmatprep.subr.bf16.mxu0 %v2406_v26  ;;  %v115_v26 = vld [vmem:[#allocation5 + $0xa8] sm:$0xff] }
  0xa6   :  { %2233 = vmatpush1.bf16.msra.mxu1 %v2232_v32  ;;  %522 = vmatprep.mubr.f32.mxu1 %v3046_v33  ;;  %v2244_v32 = vpack.c.bf16 %v312_v20, %v304_v18  ;;  %v3074_v18 = vld [vmem:[#allocation2 + $0xf0] sm:$0xff]  ;;  %v2252_v20 = vpack.c.bf16 %v344_v2, %v336_v0 }
  0xa7   :  { %2235 = vmatprep.subr.bf16.mxu1 %v2234_v35  ;;  %v2408_v35 = vpack.c.bf16 %v1190_v29, %v1188_v28  ;;  %v123_v28 = vld [vmem:[#allocation5 + $0xe8] sm:$0xff]  ;;  %v1206_v0 = vld [vmem:[#allocation7 + $0x150] sm:$0xff] }
  0xa8   :  { %v1201_v29 = vld [vmem:[#allocation7 + $0x128] sm:$0xff]  ;;  %v2258_v45 = vpack.c.bf16 %v123_v28, %v115_v26  ;;  %v146_v28 = vld [vmem:[#allocation5 + $0x1a0] sm:$0xff] }
  0xa9   :  { %523 = vmatmul.mubr.f32.gmra.mrb[22].mxu1 %v3050_v52  ;;  %2409 = vmatpush1.bf16.msra.mxu0 %v2408_v35 }
  0xaa   :  { %2237 = vmatpush1.bf16.msra.mxu1 %v2236_v53  ;;  %528 = vmatprep.mubr.f32.mxu1 %v3052_v54  ;;  %v1194_v53 = vld [vmem:[#allocation7 + $0xf0] sm:$0xff] }
  0xab   :  { %2239 = vmatprep.subr.bf16.mxu1 %v2238_v56  ;;  %v2248_v56 = vpack.c.bf16 %v328_v39, %v320_v37  ;;  %v2412_v62 = vpack.c.bf16 %v1194_v53, %v1192_v50  ;;  %2411 = vmatprep.subr.bf16.mxu0 %v2410_v48  ;;  %v1202_v37 = vld [vmem:[#allocation7 + $0x130] sm:$0xff]  ;;  %v2256_v39 = vpack.c.bf16 %v106_v24, %v98_v23  ;;  %v131_v48 = vld [vmem:[#allocation5 + $0x128] sm:$0xff] }
  0xac   :  { %v139_v50 = vld [vmem:[#allocation5 + $0x168] sm:$0xff] }
  0xad   :  { %529 = vmatmul.mubr.f32.gmra.mrb[24].mxu1 %v3056_v8  ;;  %2413 = vmatpush1.bf16.msra.mxu0 %v2412_v62  ;;  %v1205_v53 = vld [vmem:[#allocation7 + $0x148] sm:$0xff]  ;;  %v2262_v4 = vpack.c.bf16 %v139_v50, %v131_v48  ;;  %v162_v50 = vld [vmem:[#allocation5 + $0x220] sm:$0xff] }
  0xae   :  { %2241 = vmatpush1.bf16.msra.mxu1 %v2240_v10  ;;  %534 = vmatprep.mubr.f32.mxu1 %v3058_v12  ;;  %v2414_v10 = vpack.c.bf16 %v1199_v7, %v1197_v6  ;;  %v138_v6 = vld [vmem:[#allocation5 + $0x160] sm:$0xff]  ;;  %v147_v7 = vld [vmem:[#allocation5 + $0x1a8] sm:$0xff] }
  0xaf   :  { %2243 = vmatprep.subr.bf16.mxu1 %v2242_v16  ;;  %v1198_v16 = vld [vmem:[#allocation7 + $0x110] sm:$0xff]  ;;  %v2264_v23 = vpack.c.bf16 %v138_v6, %v130_v5 }
  0xb0   :  { %v2416_v21 = vpack.c.bf16 %v1198_v16, %v1196_v14  ;;  %2415 = vmatprep.subr.bf16.mxu0 %v2414_v10  ;;  %v155_v10 = vld [vmem:[#allocation5 + $0x1e8] sm:$0xff]  ;;  %v1211_v16 = vld [vmem:[#allocation7 + $0x178] sm:$0xff] }
  0xb1   :  { %535 = vmatmul.mubr.f32.gmra.mrb[26].mxu1 %v3062_v30  ;;  %v1209_v14 = vld [vmem:[#allocation7 + $0x168] sm:$0xff]  ;;  %v2266_v26 = vpack.c.bf16 %v155_v10, %v147_v7  ;;  %v178_v10 = vld [vmem:[#allocation5 + $0x2a0] sm:$0xff] }
  0xb2   :  { %2245 = vmatpush1.bf16.msra.mxu1 %v2244_v32  ;;  %540 = vmatprep.mubr.f32.mxu1 %v3064_v34  ;;  %v1203_v32 = vld [vmem:[#allocation7 + $0x138] sm:$0xff] }
  0xb3   :  { %2247 = vmatprep.subr.bf16.mxu1 %v2246_v36  ;;  %2417 = vmatpush1.bf16.msra.mxu0 %v2416_v21  ;;  %v2418_v35 = vpack.c.bf16 %v1203_v32, %v1201_v29  ;;  %v1200_v36 = vld [vmem:[#allocation7 + $0x120] sm:$0xff]  ;;  %v163_v32 = vld [vmem:[#allocation5 + $0x228] sm:$0xff] }
  0xb4   :  { %v2420_v44 = vpack.c.bf16 %v1202_v37, %v1200_v36  ;;  %v1208_v21 = vld [vmem:[#allocation7 + $0x160] sm:$0xff]  ;;  %v1213_v36 = vld [vmem:[#allocation7 + $0x188] sm:$0xff]  ;;  %v1215_v37 = vld [vmem:[#allocation7 + $0x198] sm:$0xff] }
  0xb5   :  { %541 = vmatmul.mubr.f32.gmra.mrb[28].mxu1 %v3068_v55  ;;  %2419 = vmatprep.subr.bf16.mxu0 %v2418_v35  ;;  %v154_v29 = vld [vmem:[#allocation5 + $0x1e0] sm:$0xff]  ;;  %v171_v35 = vld [vmem:[#allocation5 + $0x268] sm:$0xff] }
  0xb6   :  { %2249 = vmatpush1.bf16.msra.mxu1 %v2248_v56  ;;  %546 = vmatprep.mubr.f32.mxu1 %v3070_v60  ;;  %v1207_v56 = vld [vmem:[#allocation7 + $0x158] sm:$0xff]  ;;  %v2270_v48 = vpack.c.bf16 %v171_v35, %v163_v32  ;;  %v194_v35 = vld [vmem:[#allocation5 + $0x320] sm:$0xff] }
  0xb7   :  { %2251 = vmatprep.subr.bf16.mxu1 %v2250_v63  ;;  %2421 = vmatpush1.bf16.msra.mxu0 %v2420_v44  ;;  %v2422_v62 = vpack.c.bf16 %v1207_v56, %v1205_v53  ;;  %v1204_v63 = vld [vmem:[#allocation7 + $0x140] sm:$0xff]  ;;  %v179_v56 = vld [vmem:[#allocation5 + $0x2a8] sm:$0xff] }
  0xb8   :  { %v2424_v2 = vpack.c.bf16 %v1206_v0, %v1204_v63  ;;  %v1212_v44 = vld [vmem:[#allocation7 + $0x180] sm:$0xff]  ;;  %v1217_v63 = vld [vmem:[#allocation7 + $0x1a8] sm:$0xff]  ;;  %v1219_v0 = vld [vmem:[#allocation7 + $0x1b8] sm:$0xff] }
  0xb9   :  { %547 = vmatmul.mubr.f32.gmra.mrb[30].mxu1 %v3074_v18  ;;  %2423 = vmatprep.subr.bf16.mxu0 %v2422_v62  ;;  %v170_v53 = vld [vmem:[#allocation5 + $0x260] sm:$0xff]  ;;  %v187_v62 = vld [vmem:[#allocation5 + $0x2e8] sm:$0xff] }
  0xba   :  { %2253 = vmatpush1.bf16.msra.mxu1 %v2252_v20  ;;  %617 = vmatprep.mubr.f32.mxu1 %v2981_v41  ;;  %v2260_v41 = vpack.c.bf16 %v122_v47, %v114_v46  ;;  %v2426_v20 = vpack.c.bf16 %v1211_v16, %v1209_v14  ;;  %v2268_v46 = vpack.c.bf16 %v154_v29, %v146_v28  ;;  %v186_v14 = vld [vmem:[#allocation5 + $0x2e0] sm:$0xff]  ;;  %v195_v16 = vld [vmem:[#allocation5 + $0x328] sm:$0xff] }
  0xbb   :  { %2255 = vmatprep.subr.bf16.mxu1 %v2254_v22  ;;  %2425 = vmatpush1.bf16.msra.mxu0 %v2424_v2  ;;  %v1210_v22 = vld [vmem:[#allocation7 + $0x170] sm:$0xff]  ;;  %v1216_v2 = vld [vmem:[#allocation7 + $0x1a0] sm:$0xff]  ;;  %v2272_v5 = vpack.c.bf16 %v170_v53, %v162_v50  ;;  %v2274_v7 = vpack.c.bf16 %v187_v62, %v179_v56  ;;  %v2276_v28 = vpack.c.bf16 %v186_v14, %v178_v10 }
  0xbc   :  { %v2428_v24 = vpack.c.bf16 %v1210_v22, %v1208_v21  ;;  %2427 = vmatprep.subr.bf16.mxu0 %v2426_v20  ;;  %v203_v20 = vld [vmem:[#allocation5 + $0x368] sm:$0xff]  ;;  %v1223_v22 = vld [vmem:[#allocation7 + $0x1d8] sm:$0xff]  ;;  %v210_v62 = vld [vmem:[#allocation5 + $0x3a0] sm:$0xff] }
  0xbd   :  { %618 = vmatmul.mubr.f32.vlgmr.msra.gmra.mrb[32].mxu1 %v2984_v40  ;;  %v1221_v21 = vld [vmem:[#allocation7 + $0x1c8] sm:$0xff]  ;;  %v2278_v32 = vpack.c.bf16 %v203_v20, %v195_v16  ;;  %v226_v10 = vld [vmem:[#allocation5 + $0x420] sm:$0xff] }
  0xbe   :  { %2257 = vmatpush1.bf16.msra.mxu1 %v2256_v39  ;;  %623 = vmatprep.mubr.f32.mxu1 %v2986_v43  ;;  %v2430_v39 = vpack.c.bf16 %v1215_v37, %v1213_v36  ;;  %v202_v36 = vld [vmem:[#allocation5 + $0x360] sm:$0xff]  ;;  %v211_v37 = vld [vmem:[#allocation5 + $0x3a8] sm:$0xff] }
  0xbf   :  { %2259 = vmatprep.subr.bf16.mxu1 %v2258_v45  ;;  %2429 = vmatpush1.bf16.msra.mxu0 %v2428_v24  ;;  %v1214_v45 = vld [vmem:[#allocation7 + $0x190] sm:$0xff]  ;;  %v1220_v24 = vld [vmem:[#allocation7 + $0x1c0] sm:$0xff]  ;;  %v2280_v50 = vpack.c.bf16 %v202_v36, %v194_v35  ;;  %v243_v16 = vld [vmem:[#allocation5 + $0x4a8] sm:$0xff] }
  0xc0   :  { %v2432_v47 = vpack.c.bf16 %v1214_v45, %v1212_v44  ;;  %2431 = vmatprep.subr.bf16.mxu0 %v2430_v39  ;;  %v219_v39 = vld [vmem:[#allocation5 + $0x3e8] sm:$0xff]  ;;  %v1227_v45 = vld [vmem:[#allocation7 + $0x1f8] sm:$0xff]  ;;  %v234_v14 = vld [vmem:[#allocation5 + $0x460] sm:$0xff] }
  0xc1   :  { %624 = vmatmul.mubr.f32.gmra.mrb[34].mxu1 %v2990_v49  ;;  %v1225_v44 = vld [vmem:[#allocation7 + $0x1e8] sm:$0xff]  ;;  %v2282_v56 = vpack.c.bf16 %v219_v39, %v211_v37  ;;  %v258_v35 = vld [vmem:[#allocation5 + $0x520] sm:$0xff] }
  0xc2   :  { %2261 = vmatpush1.bf16.msra.mxu1 %v2260_v41  ;;  %629 = vmatprep.mubr.f32.mxu1 %v2992_v51  ;;  %v2434_v41 = vpack.c.bf16 %v1219_v0, %v1217_v63  ;;  %v218_v63 = vld [vmem:[#allocation5 + $0x3e0] sm:$0xff]  ;;  %v227_v0 = vld [vmem:[#allocation5 + $0x428] sm:$0xff] }
  0xc3   :  { %2263 = vmatprep.subr.bf16.mxu1 %v2262_v4  ;;  %2433 = vmatpush1.bf16.msra.mxu0 %v2432_v47  ;;  %v1218_v4 = vld [vmem:[#allocation7 + $0x1b0] sm:$0xff]  ;;  %v1224_v47 = vld [vmem:[#allocation7 + $0x1e0] sm:$0xff]  ;;  %v251_v20 = vld [vmem:[#allocation5 + $0x4e8] sm:$0xff] }
  0xc4   :  { %v2436_v6 = vpack.c.bf16 %v1218_v4, %v1216_v2  ;;  %2435 = vmatprep.subr.bf16.mxu0 %v2434_v41  ;;  %v235_v41 = vld [vmem:[#allocation5 + $0x468] sm:$0xff]  ;;  %v1231_v4 = vld [vmem:[#allocation7 + $0x218] sm:$0xff]  ;;  %v266_v36 = vld [vmem:[#allocation5 + $0x560] sm:$0xff] }
  0xc5   :  { %630 = vmatmul.mubr.f32.gmra.mrb[36].mxu1 %v2996_v57  ;;  %v1229_v2 = vld [vmem:[#allocation7 + $0x208] sm:$0xff] }
  0xc6   :  { %2265 = vmatpush1.bf16.msra.mxu1 %v2264_v23  ;;  %635 = vmatprep.mubr.f32.mxu1 %v2998_v59  ;;  %v2438_v23 = vpack.c.bf16 %v1223_v22, %v1221_v21  ;;  %v2288_v21 = vpack.c.bf16 %v234_v14, %v226_v10  ;;  %v2290_v22 = vpack.c.bf16 %v251_v20, %v243_v16  ;;  %v275_v37 = vld [vmem:[#allocation5 + $0x5a8] sm:$0xff]  ;;  %v322_v20 = vld [vmem:[#allocation5 + $0x720] sm:$0xff] }
  0xc7   :  { %2267 = vmatprep.subr.bf16.mxu1 %v2266_v26  ;;  %2437 = vmatpush1.bf16.msra.mxu0 %v2436_v6  ;;  %v1222_v26 = vld [vmem:[#allocation7 + $0x1d0] sm:$0xff]  ;;  %v2284_v6 = vpack.c.bf16 %v218_v63, %v210_v62  ;;  %v283_v39 = vld [vmem:[#allocation5 + $0x5e8] sm:$0xff]  ;;  %v290_v62 = vld [vmem:[#allocation5 + $0x620] sm:$0xff] }
  0xc8   :  { %v2440_v29 = vpack.c.bf16 %v1222_v26, %v1220_v24  ;;  %2439 = vmatprep.subr.bf16.mxu0 %v2438_v23  ;;  %v242_v23 = vld [vmem:[#allocation5 + $0x4a0] sm:$0xff]  ;;  %v259_v26 = vld [vmem:[#allocation5 + $0x528] sm:$0xff] }
  0xc9   :  { %636 = vmatmul.mubr.f32.gmra.mrb[38].mxu1 %v3002_v1  ;;  %v250_v24 = vld [vmem:[#allocation5 + $0x4e0] sm:$0xff]  ;;  %v331_v10 = vld [vmem:[#allocation5 + $0x768] sm:$0xff] }
  0xca   :  { %2269 = vmatpush1.bf16.msra.mxu1 %v2268_v46  ;;  %641 = vmatprep.mubr.f32.mxu1 %v3004_v3  ;;  %v2442_v46 = vpack.c.bf16 %v1227_v45, %v1225_v44  ;;  %v2296_v44 = vpack.c.bf16 %v266_v36, %v258_v35  ;;  %v2298_v45 = vpack.c.bf16 %v283_v39, %v275_v37  ;;  %v298_v63 = vld [vmem:[#allocation5 + $0x660] sm:$0xff]  ;;  %v109_v35 = vld [vmem:[#allocation5 + $0x78] sm:$0xff]  ;;  %v100_v39 = vld [vmem:[#allocation5 + $0x30] sm:$0xff] }
  0xcb   :  { %2271 = vmatprep.subr.bf16.mxu1 %v2270_v48  ;;  %2441 = vmatpush1.bf16.msra.mxu0 %v2440_v29  ;;  %v1226_v48 = vld [vmem:[#allocation7 + $0x1f0] sm:$0xff]  ;;  %v2292_v29 = vpack.c.bf16 %v250_v24, %v242_v23  ;;  %v347_v23 = vld [vmem:[#allocation5 + $0x7e8] sm:$0xff] }
  0xcc   :  { %v2444_v53 = vpack.c.bf16 %v1226_v48, %v1224_v47  ;;  %2443 = vmatprep.subr.bf16.mxu0 %v2442_v46  ;;  %v274_v46 = vld [vmem:[#allocation5 + $0x5a0] sm:$0xff]  ;;  %v291_v48 = vld [vmem:[#allocation5 + $0x628] sm:$0xff] }
  0xcd   :  { %642 = vmatmul.mubr.f32.gmra.mrb[40].mxu1 %v3008_v9  ;;  %v282_v47 = vld [vmem:[#allocation5 + $0x5e0] sm:$0xff] }
  0xce   :  { %2273 = vmatpush1.bf16.msra.mxu1 %v2272_v5  ;;  %647 = vmatprep.mubr.f32.mxu1 %v3010_v11  ;;  %v2446_v5 = vpack.c.bf16 %v1231_v4, %v1229_v2  ;;  %v2304_v2 = vpack.c.bf16 %v298_v63, %v290_v62  ;;  %v133_v62 = vld [vmem:[#allocation5 + $0x138] sm:$0xff] }
  0xcf   :  { %2275 = vmatprep.subr.bf16.mxu1 %v2274_v7  ;;  %2445 = vmatpush1.bf16.msra.mxu0 %v2444_v53  ;;  %v2286_v7 = vpack.c.bf16 %v235_v41, %v227_v0  ;;  %v2300_v53 = vpack.c.bf16 %v282_v47, %v274_v46  ;;  %v307_v0 = vld [vmem:[#allocation5 + $0x6a8] sm:$0xff]  ;;  %v125_v46 = vld [vmem:[#allocation5 + $0xf8] sm:$0xff] }
  0xd0   :  { %2447 = vmatprep.subr.bf16.mxu0 %v2446_v5  ;;  %v315_v41 = vld [vmem:[#allocation5 + $0x6e8] sm:$0xff]  ;;  %v306_v5 = vld [vmem:[#allocation5 + $0x6a0] sm:$0xff]  ;;  %v141_v63 = vld [vmem:[#allocation5 + $0x178] sm:$0xff] }
  0xd1   :  { %648 = vmatmul.mubr.f32.gmra.mrb[42].mxu1 %v3014_v17  ;;  %v2306_v4 = vpack.c.bf16 %v315_v41, %v307_v0  ;;  %v3109_v47 = vld [vmem:[#allocation2 + $0x8] sm:$0xff]  ;;  %v2326_v41 = vpack.c.bf16 %v141_v63, %v133_v62  ;;  %v253_v62 = vld [vmem:[#allocation5 + $0x4f8] sm:$0xff] }
  0xd2   :  { %2277 = vmatpush1.bf16.msra.mxu1 %v2276_v28  ;;  %653 = vmatprep.mubr.f32.mxu1 %v3016_v19  ;;  %v267_v28 = vld [vmem:[#allocation5 + $0x568] sm:$0xff] }
  0xd3   :  { %2279 = vmatprep.subr.bf16.mxu1 %v2278_v32  ;;  %v2294_v32 = vpack.c.bf16 %v267_v28, %v259_v26  ;;  %v338_v28 = vld [vmem:[#allocation5 + $0x7a0] sm:$0xff] }
  0xd5   :  { %654 = vmatmul.mubr.f32.gmra.mrb[44].mxu1 %v3020_v25 }
  0xd6   :  { %2281 = vmatpush1.bf16.msra.mxu1 %v2280_v50  ;;  %659 = vmatprep.mubr.f32.mxu1 %v3022_v27  ;;  %v299_v50 = vld [vmem:[#allocation5 + $0x668] sm:$0xff] }
  0xd7   :  { %2283 = vmatprep.subr.bf16.mxu1 %v2282_v56  ;;  %v2302_v56 = vpack.c.bf16 %v299_v50, %v291_v48 }
  0xd9   :  { %660 = vmatmul.mubr.f32.gmra.mrb[46].mxu1 %v3026_v38 }
  0xda   :  { %2285 = vmatpush1.bf16.msra.mxu1 %v2284_v6  ;;  %665 = vmatprep.mubr.f32.mxu1 %v3028_v42  ;;  %v314_v6 = vld [vmem:[#allocation5 + $0x6e0] sm:$0xff] }
  0xdb   :  { %2287 = vmatprep.subr.bf16.mxu1 %v2286_v7  ;;  %v323_v7 = vld [vmem:[#allocation5 + $0x728] sm:$0xff]  ;;  %v2308_v14 = vpack.c.bf16 %v314_v6, %v306_v5  ;;  %v149_v5 = vld [vmem:[#allocation5 + $0x1b8] sm:$0xff] }
  0xdc   :  { %v2310_v16 = vpack.c.bf16 %v331_v10, %v323_v7  ;;  %v157_v6 = vld [vmem:[#allocation5 + $0x1f8] sm:$0xff] }
  0xdd   :  { %666 = vmatmul.mubr.f32.gmra.mrb[48].mxu1 %v3032_v58  ;;  %v2330_v10 = vpack.c.bf16 %v157_v6, %v149_v5  ;;  %v260_v5 = vld [vmem:[#allocation5 + $0x530] sm:$0xff]  ;;  %v277_v6 = vld [vmem:[#allocation5 + $0x5b8] sm:$0xff] }
  0xde   :  { %2289 = vmatpush1.bf16.msra.mxu1 %v2288_v21  ;;  %671 = vmatprep.mubr.f32.mxu1 %v3034_v61  ;;  %v330_v21 = vld [vmem:[#allocation5 + $0x760] sm:$0xff] }
  0xdf   :  { %2291 = vmatprep.subr.bf16.mxu1 %v2290_v22  ;;  %v339_v22 = vld [vmem:[#allocation5 + $0x7a8] sm:$0xff]  ;;  %v2312_v24 = vpack.c.bf16 %v330_v21, %v322_v20  ;;  %v173_v20 = vld [vmem:[#allocation5 + $0x278] sm:$0xff] }
  0xe0   :  { %v2314_v26 = vpack.c.bf16 %v347_v23, %v339_v22  ;;  %v164_v22 = vld [vmem:[#allocation5 + $0x230] sm:$0xff]  ;;  %v181_v23 = vld [vmem:[#allocation5 + $0x2b8] sm:$0xff] }
  0xe1   :  { %672 = vmatmul.mubr.f32.gmra.mrb[50].mxu1 %v3038_v13 }
  0xe2   :  { %2293 = vmatpush1.bf16.msra.mxu1 %v2292_v29  ;;  %677 = vmatprep.mubr.f32.mxu1 %v3040_v15  ;;  %v346_v29 = vld [vmem:[#allocation5 + $0x7e0] sm:$0xff] }
  0xe3   :  { %2295 = vmatprep.subr.bf16.mxu1 %v2294_v32  ;;  %v101_v32 = vld [vmem:[#allocation5 + $0x38] sm:$0xff]  ;;  %v2316_v36 = vpack.c.bf16 %v346_v29, %v338_v28  ;;  %v180_v28 = vld [vmem:[#allocation5 + $0x2b0] sm:$0xff] }
  0xe4   :  { %v2318_v37 = vpack.c.bf16 %v109_v35, %v101_v32  ;;  %v197_v29 = vld [vmem:[#allocation5 + $0x338] sm:$0xff] }
  0xe5   :  { %678 = vmatmul.mubr.f32.gmra.mrb[52].mxu1 %v3044_v31  ;;  %v205_v32 = vld [vmem:[#allocation5 + $0x378] sm:$0xff] }
  0xe6   :  { %2297 = vmatpush1.bf16.msra.mxu1 %v2296_v44  ;;  %683 = vmatprep.mubr.f32.mxu1 %v3046_v33  ;;  %v108_v44 = vld [vmem:[#allocation5 + $0x70] sm:$0xff]  ;;  %v2342_v35 = vpack.c.bf16 %v205_v32, %v197_v29  ;;  %v349_v29 = vld [vmem:[#allocation5 + $0x7f8] sm:$0xff] }
  0xe7   :  { %2299 = vmatprep.subr.bf16.mxu1 %v2298_v45  ;;  %v117_v45 = vld [vmem:[#allocation5 + $0xb8] sm:$0xff]  ;;  %v2320_v48 = vpack.c.bf16 %v108_v44, %v100_v39 }
  0xe8   :  { %v2322_v50 = vpack.c.bf16 %v125_v46, %v117_v45  ;;  %v221_v39 = vld [vmem:[#allocation5 + $0x3f8] sm:$0xff]  ;;  %v212_v45 = vld [vmem:[#allocation5 + $0x3b0] sm:$0xff] }
  0xe9   :  { %684 = vmatmul.mubr.f32.gmra.mrb[54].mxu1 %v3050_v52  ;;  %v229_v46 = vld [vmem:[#allocation5 + $0x438] sm:$0xff] }
  0xea   :  { %2301 = vmatpush1.bf16.msra.mxu1 %v2300_v53  ;;  %689 = vmatprep.mubr.f32.mxu1 %v3052_v54  ;;  %v116_v53 = vld [vmem:[#allocation5 + $0xb0] sm:$0xff] }
  0xeb   :  { %2303 = vmatprep.subr.bf16.mxu1 %v2302_v56  ;;  %v124_v56 = vld [vmem:[#allocation5 + $0xf0] sm:$0xff] }
  0xec   :  { %v2324_v0 = vpack.c.bf16 %v124_v56, %v116_v53  ;;  %v228_v53 = vld [vmem:[#allocation5 + $0x430] sm:$0xff]  ;;  %v245_v56 = vld [vmem:[#allocation5 + $0x4b8] sm:$0xff] }
  0xed   :  { %690 = vmatmul.mubr.f32.gmra.mrb[56].mxu1 %v3056_v8  ;;  %v2354_v63 = vpack.c.bf16 %v253_v62, %v245_v56  ;;  %v1228_v56 = vld [vmem:[#allocation7 + $0x200] sm:$0xff]  ;;  %v1230_v62 = vld [vmem:[#allocation7 + $0x210] sm:$0xff] }
  0xee   :  { %2305 = vmatpush1.bf16.msra.mxu1 %v2304_v2  ;;  %695 = vmatprep.mubr.f32.mxu1 %v3058_v12  ;;  %v132_v2 = vld [vmem:[#allocation5 + $0x130] sm:$0xff] }
  0xef   :  { %2307 = vmatprep.subr.bf16.mxu1 %v2306_v4  ;;  %v140_v4 = vld [vmem:[#allocation5 + $0x170] sm:$0xff] }
  0xf0   :  { %v2328_v7 = vpack.c.bf16 %v140_v4, %v132_v2  ;;  %v269_v2 = vld [vmem:[#allocation5 + $0x578] sm:$0xff] }
  0xf1   :  { %696 = vmatmul.mubr.f32.gmra.mrb[58].mxu1 %v3062_v30 }
  0xf2   :  { %2309 = vmatpush1.bf16.msra.mxu1 %v2308_v14  ;;  %701 = vmatprep.mubr.f32.mxu1 %v3064_v34  ;;  %v148_v14 = vld [vmem:[#allocation5 + $0x1b0] sm:$0xff] }
  0xf3   :  { %2311 = vmatprep.subr.bf16.mxu1 %v2310_v16  ;;  %v165_v16 = vld [vmem:[#allocation5 + $0x238] sm:$0xff] }
  0xf4   :  { %v2334_v21 = vpack.c.bf16 %v173_v20, %v165_v16  ;;  %v301_v16 = vld [vmem:[#allocation5 + $0x678] sm:$0xff] }
  0xf5   :  { %702 = vmatmul.mubr.f32.gmra.mrb[60].mxu1 %v3068_v55 }
  0xf6   :  { %2313 = vmatpush1.bf16.msra.mxu1 %v2312_v24  ;;  %707 = vmatprep.mubr.f32.mxu1 %v3070_v60  ;;  %v189_v24 = vld [vmem:[#allocation5 + $0x2f8] sm:$0xff] }
  0xf7   :  { %2315 = vmatprep.subr.bf16.mxu1 %v2314_v26  ;;  %v2338_v26 = vpack.c.bf16 %v189_v24, %v181_v23  ;;  %v308_v23 = vld [vmem:[#allocation5 + $0x6b0] sm:$0xff]  ;;  %v325_v24 = vld [vmem:[#allocation5 + $0x738] sm:$0xff] }
  0xf9   :  { %708 = vmatmul.mubr.f32.gmra.mrb[62].mxu1 %v3074_v18 }
  0xfa   :  { %2317 = vmatpush1.bf16.msra.mxu1 %v2316_v36  ;;  %778 = vmatprep.mubr.f32.mxu1 %v3109_v47  ;;  %v196_v36 = vld [vmem:[#allocation5 + $0x330] sm:$0xff] }
  0xfb   :  { %2319 = vmatprep.subr.bf16.mxu1 %v2318_v37  ;;  %v213_v37 = vld [vmem:[#allocation5 + $0x3b8] sm:$0xff] }
  0xfc   :  { %v2346_v44 = vpack.c.bf16 %v221_v39, %v213_v37  ;;  %v2781_v39 = vld [vmem:[#allocation2 + $0x30] sm:$0xff] }
  0xfd   :  { %779 = vmatmul.mubr.f32.vlgmr.msra.gmra.mrb[64].mxu1 %v2984_v40  ;;  %v156_v40 = vld [vmem:[#allocation5 + $0x1f0] sm:$0xff] }
  0xfe   :  { %2321 = vmatpush1.bf16.msra.mxu1 %v2320_v48  ;;  %784 = vmatprep.mubr.f32.mxu1 %v2986_v43  ;;  %v2332_v43 = vpack.c.bf16 %v156_v40, %v148_v14  ;;  %v237_v48 = vld [vmem:[#allocation5 + $0x478] sm:$0xff]  ;;  %v276_v14 = vld [vmem:[#allocation5 + $0x5b0] sm:$0xff] }
  0xff   :  { %2323 = vmatprep.subr.bf16.mxu1 %v2322_v50  ;;  %v2350_v50 = vpack.c.bf16 %v237_v48, %v229_v46  ;;  %v293_v40 = vld [vmem:[#allocation5 + $0x638] sm:$0xff] }
 0x100   :  { %v2366_v20 = vpack.c.bf16 %v301_v16, %v293_v40  ;;  %v2784_v46 = vld [vmem:[#allocation2 + $0x58] sm:$0xff]  ;;  %v1237_v40 = vld [vmem:[#allocation7 + $0x248] sm:$0xff] }
 0x101   :  { %785 = vmatmul.mubr.f32.gmra.mrb[66].mxu1 %v2990_v49  ;;  %v172_v49 = vld [vmem:[#allocation5 + $0x270] sm:$0xff]  ;;  %v1239_v16 = vld [vmem:[#allocation7 + $0x258] sm:$0xff] }
 0x102   :  { %2325 = vmatpush1.bf16.msra.mxu1 %v2324_v0  ;;  %790 = vmatprep.mubr.f32.mxu1 %v2992_v51  ;;  %v2336_v51 = vpack.c.bf16 %v172_v49, %v164_v22  ;;  %v244_v0 = vld [vmem:[#allocation5 + $0x4b0] sm:$0xff]  ;;  %v317_v22 = vld [vmem:[#allocation5 + $0x6f8] sm:$0xff] }
 0x103   :  { %2327 = vmatprep.subr.bf16.mxu1 %v2326_v41  ;;  %v261_v41 = vld [vmem:[#allocation5 + $0x538] sm:$0xff] }
 0x104   :  { %v2358_v4 = vpack.c.bf16 %v269_v2, %v261_v41 }
 0x105   :  { %791 = vmatmul.mubr.f32.gmra.mrb[68].mxu1 %v2996_v57  ;;  %v188_v57 = vld [vmem:[#allocation5 + $0x2f0] sm:$0xff] }
 0x106   :  { %2329 = vmatpush1.bf16.msra.mxu1 %v2328_v7  ;;  %796 = vmatprep.mubr.f32.mxu1 %v2998_v59  ;;  %v2340_v59 = vpack.c.bf16 %v188_v57, %v180_v28  ;;  %v285_v7 = vld [vmem:[#allocation5 + $0x5f8] sm:$0xff]  ;;  %v324_v28 = vld [vmem:[#allocation5 + $0x730] sm:$0xff] }
 0x107   :  { %2331 = vmatprep.subr.bf16.mxu1 %v2330_v10  ;;  %v2362_v10 = vpack.c.bf16 %v285_v7, %v277_v6  ;;  %v341_v57 = vld [vmem:[#allocation5 + $0x7b8] sm:$0xff]  ;;  %v2787_v6 = vld [vmem:[#allocation2 + $0x60] sm:$0xff] }
 0x108   :  { %v2378_v32 = vpack.c.bf16 %v349_v29, %v341_v57 }
 0x109   :  { %797 = vmatmul.mubr.f32.gmra.mrb[70].mxu1 %v3002_v1  ;;  %v204_v1 = vld [vmem:[#allocation5 + $0x370] sm:$0xff] }
 0x10a   :  { %2333 = vmatpush1.bf16.msra.mxu1 %v2332_v43  ;;  %802 = vmatprep.mubr.f32.mxu1 %v3004_v3  ;;  %v2344_v3 = vpack.c.bf16 %v204_v1, %v196_v36  ;;  %v292_v43 = vld [vmem:[#allocation5 + $0x630] sm:$0xff]  ;;  %v352_v36 = vlaneseq  ;;  %v2778_v1 = vld [vmem:[#allocation2 + $0x28] sm:$0xff] }
 0x10b   :  { %2335 = vmatprep.subr.bf16.mxu1 %v2334_v21  ;;  %v309_v21 = vld [vmem:[#allocation5 + $0x6b8] sm:$0xff] }
 0x10c   :  { %v2370_v49 = vpack.c.bf16 %v317_v22, %v309_v21  ;;  %v3144_v37 = vshrl.u32 %v352_v36, 7  ;;  %v1245_v36 = vld [vmem:[#allocation7 + $0x288] sm:$0xff] }
 0x10d   :  { %803 = vmatmul.mubr.f32.gmra.mrb[72].mxu1 %v3008_v9  ;;  %v220_v9 = vld [vmem:[#allocation5 + $0x3f0] sm:$0xff] }
 0x10e   :  { %2337 = vmatpush1.bf16.msra.mxu1 %v2336_v51  ;;  %808 = vmatprep.mubr.f32.mxu1 %v3010_v11  ;;  %v2348_v11 = vpack.c.bf16 %v220_v9, %v212_v45  ;;  %v333_v51 = vld [vmem:[#allocation5 + $0x778] sm:$0xff]  ;;  %v2783_v45 = vld [vmem:[#allocation2 + $0x40] sm:$0xff] }
 0x10f   :  { %2339 = vmatprep.subr.bf16.mxu1 %v2338_v26  ;;  %v2374_v26 = vpack.c.bf16 %v333_v51, %v325_v24  ;;  %v2790_v51 = vld [vmem:[#allocation2 + $0x88] sm:$0xff] }
 0x111   :  { %809 = vmatmul.mubr.f32.gmra.mrb[74].mxu1 %v3014_v17  ;;  %v236_v17 = vld [vmem:[#allocation5 + $0x470] sm:$0xff] }
 0x112   :  { %2341 = vmatpush1.bf16.msra.mxu1 %v2340_v59  ;;  %814 = vmatprep.mubr.f32.mxu1 %v3016_v19  ;;  %v2352_v19 = vpack.c.bf16 %v236_v17, %v228_v53  ;;  %v340_v59 = vld [vmem:[#allocation5 + $0x7b0] sm:$0xff] }
 0x113   :  { %2343 = vmatprep.subr.bf16.mxu1 %v2342_v35  ;;  %v2777_v35 = vld [vmem:[#allocation2 + $0x10] sm:$0xff] }
 0x114   :  { %v2785_v17 = vld [vmem:[#allocation2 + $0x50] sm:$0xff] }
 0x115   :  { %815 = vmatmul.mubr.f32.gmra.mrb[76].mxu1 %v3020_v25  ;;  %v252_v25 = vld [vmem:[#allocation5 + $0x4f0] sm:$0xff] }
 0x116   :  { %2345 = vmatpush1.bf16.msra.mxu1 %v2344_v3  ;;  %820 = vmatprep.mubr.f32.mxu1 %v3022_v27  ;;  %v2356_v27 = vpack.c.bf16 %v252_v25, %v244_v0  ;;  %v3150_v3 = vld [vmem:[%s3380_s2] sm:$0xff]  ;;  %v1233_v0 = vld [vmem:[#allocation7 + $0x228] sm:$0xff]  ;;  %v1235_v25 = vld [vmem:[#allocation7 + $0x238] sm:$0xff] }
 0x117   :  { %2347 = vmatprep.subr.bf16.mxu1 %v2346_v44  ;;  %v358_v44 = vsub.s32 1, %v3144_v37  ;;  %v2450_v7 = vpack.c.bf16 %v1235_v25, %v1233_v0 }
 0x119   :  { %821 = vmatmul.mubr.f32.gmra.mrb[78].mxu1 %v3026_v38  ;;  %v268_v38 = vld [vmem:[#allocation5 + $0x570] sm:$0xff]  ;;  %v3161_v48 = vrot.slane %v3150_v3, %v358_v44 }
 0x11a   :  { %2349 = vmatpush1.bf16.msra.mxu1 %v2348_v11  ;;  %826 = vmatprep.mubr.f32.mxu1 %v3028_v42  ;;  %v2360_v42 = vpack.c.bf16 %v268_v38, %v260_v5 }
 0x11b   :  { %2351 = vmatprep.subr.bf16.mxu1 %v2350_v50 }
 0x11d   :  { %827 = vmatmul.mubr.f32.gmra.mrb[80].mxu1 %v3032_v58  ;;  %v284_v58 = vld [vmem:[#allocation5 + $0x5f0] sm:$0xff] }
 0x11e   :  { %2353 = vmatpush1.bf16.msra.mxu1 %v2352_v19  ;;  %832 = vmatprep.mubr.f32.mxu1 %v3034_v61  ;;  %v2364_v61 = vpack.c.bf16 %v284_v58, %v276_v14  ;;  %v2786_v19 = vld [vmem:[#allocation2 + $0x68] sm:$0xff]  ;;  %v2788_v58 = vld [vmem:[#allocation2 + $0x78] sm:$0xff] }
 0x11f   :  { %2355 = vmatprep.subr.bf16.mxu1 %v2354_v63 }
 0x121   :  { %833 = vmatmul.mubr.f32.gmra.mrb[82].mxu1 %v3038_v13  ;;  %v300_v13 = vld [vmem:[#allocation5 + $0x670] sm:$0xff] }
 0x122   :  { %2357 = vmatpush1.bf16.msra.mxu1 %v2356_v27  ;;  %838 = vmatprep.mubr.f32.mxu1 %v3040_v15  ;;  %v2368_v15 = vpack.c.bf16 %v300_v13, %v292_v43  ;;  %v2448_v27 = vpack.c.bf16 %v1230_v62, %v1228_v56  ;;  %v2794_v62 = vld [vmem:[#allocation2 + $0xa8] sm:$0xff] }
 0x123   :  { %2359 = vmatprep.subr.bf16.mxu1 %v2358_v4 }
 0x125   :  { %839 = vmatmul.mubr.f32.gmra.mrb[84].mxu1 %v3044_v31  ;;  %v316_v31 = vld [vmem:[#allocation5 + $0x6f0] sm:$0xff] }
 0x126   :  { %2361 = vmatpush1.bf16.msra.mxu1 %v2360_v42  ;;  %844 = vmatprep.mubr.f32.mxu1 %v3046_v33  ;;  %v2372_v33 = vpack.c.bf16 %v316_v31, %v308_v23  ;;  %v1232_v42 = vld [vmem:[#allocation7 + $0x220] sm:$0xff]  ;;  %v1238_v31 = vld [vmem:[#allocation7 + $0x250] sm:$0xff] }
 0x127   :  { %2363 = vmatprep.subr.bf16.mxu1 %v2362_v10  ;;  %v1234_v10 = vld [vmem:[#allocation7 + $0x230] sm:$0xff]  ;;  %v1236_v23 = vld [vmem:[#allocation7 + $0x240] sm:$0xff] }
 0x128   :  { %v2452_v43 = vpack.c.bf16 %v1234_v10, %v1232_v42  ;;  %v2456_v57 = vpack.c.bf16 %v1238_v31, %v1236_v23  ;;  %v2796_v10 = vld [vmem:[#allocation2 + $0xb8] sm:$0xff]  ;;  %v2798_v31 = vld [vmem:[#allocation2 + $0xc8] sm:$0xff] }
 0x129   :  { %845 = vmatmul.mubr.f32.gmra.mrb[86].mxu1 %v3050_v52  ;;  %v332_v52 = vld [vmem:[#allocation5 + $0x770] sm:$0xff] }
 0x12a   :  { %2365 = vmatpush1.bf16.msra.mxu1 %v2364_v61  ;;  %850 = vmatprep.mubr.f32.mxu1 %v3052_v54  ;;  %v2376_v54 = vpack.c.bf16 %v332_v52, %v324_v28 }
 0x12b   :  { %2367 = vmatprep.subr.bf16.mxu1 %v2366_v20 }
 0x12d   :  { %851 = vmatmul.mubr.f32.gmra.mrb[88].mxu1 %v3056_v8  ;;  %v348_v8 = vld [vmem:[#allocation5 + $0x7f0] sm:$0xff] }
 0x12e   :  { %2369 = vmatpush1.bf16.msra.mxu1 %v2368_v15  ;;  %856 = vmatprep.mubr.f32.mxu1 %v3058_v12  ;;  %v2380_v12 = vpack.c.bf16 %v348_v8, %v340_v59  ;;  %v2789_v15 = vld [vmem:[#allocation2 + $0x70] sm:$0xff]  ;;  %v2791_v59 = vld [vmem:[#allocation2 + $0x80] sm:$0xff] }
 0x12f   :  { %2371 = vmatprep.subr.bf16.mxu1 %v2370_v49  ;;  %v2454_v49 = vpack.c.bf16 %v1239_v16, %v1237_v40 }
 0x131   :  { %857 = vmatmul.mubr.f32.gmra.mrb[90].mxu1 %v3062_v30  ;;  %v2775_v30 = vld [vmem:[#allocation2] sm:$0xff] }
 0x132   :  { %2373 = vmatpush1.bf16.msra.mxu1 %v2372_v33  ;;  %862 = vmatprep.mubr.f32.mxu1 %v3064_v34  ;;  %v2776_v34 = vld [vmem:[#allocation2 + $0x18] sm:$0xff]  ;;  %v1241_v33 = vld [vmem:[#allocation7 + $0x268] sm:$0xff] }
 0x133   :  { %2375 = vmatprep.subr.bf16.mxu1 %v2374_v26  ;;  %v1243_v26 = vld [vmem:[#allocation7 + $0x278] sm:$0xff] }
 0x134   :  { %v2458_v8 = vpack.c.bf16 %v1243_v26, %v1241_v33 }
 0x135   :  { %863 = vmatmul.mubr.f32.gmra.mrb[92].mxu1 %v3068_v55  ;;  %v2779_v55 = vld [vmem:[#allocation2 + $0x20] sm:$0xff] }
 0x136   :  { %2377 = vmatpush1.bf16.msra.mxu1 %v2376_v54  ;;  %868 = vmatprep.mubr.f32.mxu1 %v3070_v60  ;;  %v2780_v60 = vld [vmem:[#allocation2 + $0x38] sm:$0xff] }
 0x137   :  { %2379 = vmatprep.subr.bf16.mxu1 %v2378_v32 }
 0x139   :  { %869 = vmatmul.mubr.f32.gmra.mrb[94].mxu1 %v3074_v18  ;;  %v354_v18 = vsub.s32 0, %v3144_v37 }
 0x13a   :  { %2381 = vmatpush1.bf16.msra.mxu1 %v2380_v12  ;;  %939 = vmatprep.mubr.f32.mxu1 %v3109_v47  ;;  %v2782_v47 = vld [vmem:[#allocation2 + $0x48] sm:$0xff]  ;;  %v1240_v12 = vld [vmem:[#allocation7 + $0x260] sm:$0xff] }
 0x13b   :  { %v3156_v9 = vrot.slane %v3150_v3, %v354_v18 }
 0x13d   :  { %940 = vmatmul.mubr.f32.vlgmr.msra.gmra.mrb[96].mxu1 %v2775_v30  ;;  %v1242_v30 = vld [vmem:[#allocation7 + $0x270] sm:$0xff] }
 0x13e   :  { %945 = vmatprep.mubr.f32.mxu1 %v2776_v34 }
 0x141   :  { %946 = vmatmul.mubr.f32.gmra.mrb[98].mxu1 %v2777_v35  ;;  %v2792_v35 = vld [vmem:[#allocation2 + $0x98] sm:$0xff] }
 0x142   :  { %951 = vmatprep.mubr.f32.mxu1 %v2778_v1  ;;  %v1247_v1 = vld [vmem:[#allocation7 + $0x298] sm:$0xff] }
 0x145   :  { %952 = vmatmul.mubr.f32.gmra.mrb[100].mxu1 %v2779_v55 }
 0x146   :  { %957 = vmatprep.mubr.f32.mxu1 %v2780_v60 }
 0x149   :  { %958 = vmatmul.mubr.f32.gmra.mrb[102].mxu1 %v2781_v39  ;;  %v2460_v39 = vpack.c.bf16 %v1242_v30, %v1240_v12  ;;  %v2800_v30 = vld [vmem:[#allocation2 + $0xd8] sm:$0xff] }
 0x14a   :  { %963 = vmatprep.mubr.f32.mxu1 %v2782_v47 }
 0x14d   :  { %964 = vmatmul.mubr.f32.gmra.mrb[104].mxu1 %v2783_v45 }
 0x14e   :  { %969 = vmatprep.mubr.f32.mxu1 %v2784_v46 }
 0x150   :  { %v458_v11 = vpop.f32.mrb[0].mxu1 }
 0x151   :  { %v459_v50 = vadd.f32 %v458_v11, %v3156_v9  ;;  %v460_v53 = vpop.f32.mrb[1].mxu1  ;;  %970 = vmatmul.mubr.f32.gmra.mrb[106].mxu1 %v2785_v17  ;;  %v2793_v11 = vld [vmem:[#allocation2 + $0x90] sm:$0xff] }
 0x152   :  { %975 = vmatprep.mubr.f32.mxu1 %v2786_v19  ;;  %v461_v63 = vadd.f32 %v460_v53, %v3161_v48  ;;  %v1244_v53 = vld [vmem:[#allocation7 + $0x280] sm:$0xff]  ;;  %v1246_v17 = vld [vmem:[#allocation7 + $0x290] sm:$0xff]  ;;  %v1249_v19 = vld [vmem:[#allocation7 + $0x2a8] sm:$0xff] }
 0x153   :  { %v1036_v4 = vmax.f32 %v459_v50, 0.0  ;;  %v2462_v50 = vpack.c.bf16 %v1247_v1, %v1245_v36 }
 0x154   :  { %v464_v41 = vpop.f32.mrb[2].mxu1  ;;  %v1037_v2 = vmax.f32 %v461_v63, 0.0  ;;  %v1251_v63 = vld [vmem:[#allocation7 + $0x2b8] sm:$0xff] }
 0x155   :  { %v465_v5 = vadd.f32 %v464_v41, %v3156_v9  ;;  %v466_v38 = vpop.f32.mrb[3].mxu1  ;;  %976 = vmatmul.mubr.f32.gmra.mrb[108].mxu1 %v2787_v6  ;;  %v2464_v41 = vpack.c.bf16 %v1246_v17, %v1244_v53  ;;  %v1248_v6 = vld [vmem:[#allocation7 + $0x2a0] sm:$0xff]  ;;  %v2802_v17 = vld [vmem:[#allocation2 + $0xe8] sm:$0xff] }
 0x156   :  { %v467_v14 = vadd.f32 %v466_v38, %v3161_v48  ;;  %1496 = vmatprep.mubr.f32.mxu0 %v1037_v2  ;;  %981 = vmatprep.mubr.f32.mxu1 %v2788_v58  ;;  %v2466_v38 = vpack.c.bf16 %v1251_v63, %v1249_v19  ;;  %v1255_v58 = vld [vmem:[#allocation7 + $0x2d8] sm:$0xff] }
 0x157   :  { %1497 = vmatmul.mubr.f32.vlgmr.msra.gmra.mrb[0].mxu0 %v1036_v4  ;;  %v1044_v13 = vmax.f32 %v465_v5, 0.0  ;;  %v2795_v5 = vld [vmem:[#allocation2 + $0xa0] sm:$0xff] }
 0x158   :  { %v1045_v61 = vmax.f32 %v467_v14, 0.0  ;;  %v470_v20 = vpop.f32.mrb[4].mxu1  ;;  %2449 = vmatpush1.bf16.msra.mxu0 %v2448_v27  ;;  %v1253_v14 = vld [vmem:[#allocation7 + $0x2c8] sm:$0xff] }
 0x159   :  { %v471_v21 = vadd.f32 %v470_v20, %v3156_v9  ;;  %v472_v22 = vpop.f32.mrb[5].mxu1  ;;  %982 = vmatmul.mubr.f32.gmra.mrb[110].mxu1 %v2789_v15  ;;  %2451 = vmatprep.subr.bf16.mxu0 %v2450_v7  ;;  %v1250_v7 = vld [vmem:[#allocation7 + $0x2b0] sm:$0xff]  ;;  %v1252_v15 = vld [vmem:[#allocation7 + $0x2c0] sm:$0xff] }
 0x15a   :  { %v473_v24 = vadd.f32 %v472_v22, %v3161_v48  ;;  %1502 = vmatprep.mubr.f32.mxu0 %v1045_v61  ;;  %987 = vmatprep.mubr.f32.mxu1 %v2790_v51  ;;  %v2468_v61 = vpack.c.bf16 %v1250_v7, %v1248_v6  ;;  %v2470_v22 = vpack.c.bf16 %v1255_v58, %v1253_v14  ;;  %v1259_v51 = vld [vmem:[#allocation7 + $0x2f8] sm:$0xff] }
 0x15b   :  { %1503 = vmatmul.mubr.f32.gmra.mrb[2].mxu0 %v1044_v13  ;;  %v1052_v29 = vmax.f32 %v471_v21, 0.0  ;;  %v2797_v21 = vld [vmem:[#allocation2 + $0xb0] sm:$0xff]  ;;  %v2804_v7 = vld [vmem:[#allocation2 + $0xf8] sm:$0xff] }
 0x15c   :  { %v1053_v28 = vmax.f32 %v473_v24, 0.0  ;;  %v476_v52 = vpop.f32.mrb[6].mxu1  ;;  %2453 = vmatpush1.bf16.msra.mxu0 %v2452_v43  ;;  %v1257_v24 = vld [vmem:[#allocation7 + $0x2e8] sm:$0xff] }
 0x15d   :  { %v477_v54 = vadd.f32 %v476_v52, %v3156_v9  ;;  %v478_v32 = vpop.f32.mrb[7].mxu1  ;;  %988 = vmatmul.mubr.f32.gmra.mrb[112].mxu1 %v2791_v59  ;;  %2455 = vmatprep.subr.bf16.mxu0 %v2454_v49  ;;  %v1254_v49 = vld [vmem:[#allocation7 + $0x2d0] sm:$0xff]  ;;  %v1256_v59 = vld [vmem:[#allocation7 + $0x2e0] sm:$0xff] }
 0x15e   :  { %v479_v34 = vadd.f32 %v478_v32, %v3161_v48  ;;  %1508 = vmatprep.mubr.f32.mxu0 %v1053_v28  ;;  %993 = vmatprep.mubr.f32.mxu1 %v2792_v35  ;;  %v2472_v28 = vpack.c.bf16 %v1254_v49, %v1252_v15  ;;  %v2474_v32 = vpack.c.bf16 %v1259_v51, %v1257_v24  ;;  %v1263_v35 = vld [vmem:[#allocation7 + $0x318] sm:$0xff]  ;;  %v1273_v49 = vld [vmem:[#allocation7 + $0x368] sm:$0xff] }
 0x15f   :  { %1509 = vmatmul.mubr.f32.gmra.mrb[4].mxu0 %v1052_v29  ;;  %v1060_v47 = vmax.f32 %v477_v54, 0.0  ;;  %v2799_v54 = vld [vmem:[#allocation2 + $0xc0] sm:$0xff] }
 0x160   :  { %v1061_v55 = vmax.f32 %v479_v34, 0.0  ;;  %v482_v60 = vpop.f32.mrb[8].mxu1  ;;  %2457 = vmatpush1.bf16.msra.mxu0 %v2456_v57  ;;  %v1261_v34 = vld [vmem:[#allocation7 + $0x308] sm:$0xff] }
 0x161   :  { %v483_v45 = vadd.f32 %v482_v60, %v3156_v9  ;;  %v484_v46 = vpop.f32.mrb[9].mxu1  ;;  %994 = vmatmul.mubr.f32.gmra.mrb[114].mxu1 %v2793_v11  ;;  %2459 = vmatprep.subr.bf16.mxu0 %v2458_v8  ;;  %v1258_v8 = vld [vmem:[#allocation7 + $0x2f0] sm:$0xff]  ;;  %v1260_v11 = vld [vmem:[#allocation7 + $0x300] sm:$0xff] }
 0x162   :  { %v485_v56 = vadd.f32 %v484_v46, %v3161_v48  ;;  %1514 = vmatprep.mubr.f32.mxu0 %v1061_v55  ;;  %999 = vmatprep.mubr.f32.mxu1 %v2794_v62  ;;  %v2476_v55 = vpack.c.bf16 %v1258_v8, %v1256_v59  ;;  %v2478_v46 = vpack.c.bf16 %v1263_v35, %v1261_v34  ;;  %v1267_v62 = vld [vmem:[#allocation7 + $0x338] sm:$0xff] }
 0x163   :  { %1515 = vmatmul.mubr.f32.gmra.mrb[6].mxu0 %v1060_v47  ;;  %v1068_v2 = vmax.f32 %v483_v45, 0.0  ;;  %v2801_v45 = vld [vmem:[#allocation2 + $0xd0] sm:$0xff]  ;;  %v1279_v59 = vld [vmem:[#allocation7 + $0x398] sm:$0xff] }
 0x164   :  { %v1069_v0 = vmax.f32 %v485_v56, 0.0  ;;  %v488_v25 = vpop.f32.mrb[10].mxu1  ;;  %2461 = vmatpush1.bf16.msra.mxu0 %v2460_v39  ;;  %v1265_v56 = vld [vmem:[#allocation7 + $0x328] sm:$0xff] }
 0x165   :  { %v489_v27 = vadd.f32 %v488_v25, %v3156_v9  ;;  %v490_v4 = vpop.f32.mrb[11].mxu1  ;;  %1000 = vmatmul.mubr.f32.gmra.mrb[116].mxu1 %v2795_v5  ;;  %2463 = vmatprep.subr.bf16.mxu0 %v2462_v50  ;;  %v1262_v50 = vld [vmem:[#allocation7 + $0x310] sm:$0xff]  ;;  %v1264_v5 = vld [vmem:[#allocation7 + $0x320] sm:$0xff] }
 0x166   :  { %v491_v42 = vadd.f32 %v490_v4, %v3161_v48  ;;  %1520 = vmatprep.mubr.f32.mxu0 %v1069_v0  ;;  %1005 = vmatprep.mubr.f32.mxu1 %v2796_v10  ;;  %v2480_v0 = vpack.c.bf16 %v1262_v50, %v1260_v11  ;;  %v2482_v4 = vpack.c.bf16 %v1267_v62, %v1265_v56  ;;  %v1271_v10 = vld [vmem:[#allocation7 + $0x358] sm:$0xff] }
 0x167   :  { %1521 = vmatmul.mubr.f32.gmra.mrb[8].mxu0 %v1068_v2  ;;  %v1076_v20 = vmax.f32 %v489_v27, 0.0  ;;  %v2803_v27 = vld [vmem:[#allocation2 + $0xe0] sm:$0xff] }
 0x168   :  { %v1077_v40 = vmax.f32 %v491_v42, 0.0  ;;  %v494_v16 = vpop.f32.mrb[12].mxu1  ;;  %2465 = vmatpush1.bf16.msra.mxu0 %v2464_v41  ;;  %v1269_v42 = vld [vmem:[#allocation7 + $0x348] sm:$0xff] }
 0x169   :  { %v495_v43 = vadd.f32 %v494_v16, %v3156_v9  ;;  %v496_v13 = vpop.f32.mrb[13].mxu1  ;;  %1006 = vmatmul.mubr.f32.gmra.mrb[118].mxu1 %v2797_v21  ;;  %2467 = vmatprep.subr.bf16.mxu0 %v2466_v38  ;;  %v1266_v38 = vld [vmem:[#allocation7 + $0x330] sm:$0xff]  ;;  %v1268_v21 = vld [vmem:[#allocation7 + $0x340] sm:$0xff] }
 0x16a   :  { %v497_v23 = vadd.f32 %v496_v13, %v3161_v48  ;;  %1526 = vmatprep.mubr.f32.mxu0 %v1077_v40  ;;  %1011 = vmatprep.mubr.f32.mxu1 %v2798_v31  ;;  %v2484_v40 = vpack.c.bf16 %v1266_v38, %v1264_v5  ;;  %v2486_v13 = vpack.c.bf16 %v1271_v10, %v1269_v42  ;;  %v362_v42 = vsub.s32 2, %v3144_v37  ;;  %v1284_v10 = vld [vmem:[#allocation7 + $0x3c0] sm:$0xff] }
 0x16b   :  { %1527 = vmatmul.mubr.f32.gmra.mrb[10].mxu0 %v1076_v20  ;;  %v1084_v52 = vmax.f32 %v495_v43, 0.0  ;;  %v2805_v43 = vld [vmem:[#allocation2 + $0xf0] sm:$0xff] }
 0x16c   :  { %v1085_v33 = vmax.f32 %v497_v23, 0.0  ;;  %v500_v26 = vpop.f32.mrb[14].mxu1  ;;  %2469 = vmatpush1.bf16.msra.mxu0 %v2468_v61  ;;  %v1275_v23 = vld [vmem:[#allocation7 + $0x378] sm:$0xff] }
 0x16d   :  { %v501_v57 = vadd.f32 %v500_v26, %v3156_v9  ;;  %v502_v29 = vpop.f32.mrb[15].mxu1  ;;  %1012 = vmatmul.mubr.f32.gmra.mrb[120].mxu1 %v2799_v54  ;;  %2471 = vmatprep.subr.bf16.mxu0 %v2470_v22  ;;  %v1270_v22 = vld [vmem:[#allocation7 + $0x350] sm:$0xff] }
 0x16e   :  { %v503_v12 = vadd.f32 %v502_v29, %v3161_v48  ;;  %1532 = vmatprep.mubr.f32.mxu0 %v1085_v33  ;;  %1017 = vmatprep.mubr.f32.mxu1 %v2800_v30  ;;  %v2488_v51 = vpack.c.bf16 %v1270_v22, %v1268_v21  ;;  %v1274_v29 = vld [vmem:[#allocation7 + $0x370] sm:$0xff] }
 0x16f   :  { %1533 = vmatmul.mubr.f32.gmra.mrb[12].mxu0 %v1084_v52  ;;  %v1092_v60 = vmax.f32 %v501_v57, 0.0  ;;  %v2490_v52 = vpack.c.bf16 %v1275_v23, %v1273_v49  ;;  %v1272_v57 = vld [vmem:[#allocation7 + $0x360] sm:$0xff]  ;;  %v3197_v49 = vrot.slane %v3150_v3, %v362_v42 }
 0x170   :  { %v1093_v36 = vmax.f32 %v503_v12, 0.0  ;;  %v506_v1 = vpop.f32.mrb[16].mxu1  ;;  %2473 = vmatpush1.bf16.msra.mxu0 %v2472_v28  ;;  %v2492_v30 = vpack.c.bf16 %v1274_v29, %v1272_v57 }
 0x171   :  { %v507_v39 = vadd.f32 %v506_v1, %v3156_v9  ;;  %v508_v47 = vpop.f32.mrb[17].mxu1  ;;  %1018 = vmatmul.mubr.f32.gmra.mrb[122].mxu1 %v2801_v45  ;;  %2475 = vmatprep.subr.bf16.mxu0 %v2474_v32  ;;  %v1277_v32 = vld [vmem:[#allocation7 + $0x388] sm:$0xff]  ;;  %v1283_v45 = vld [vmem:[#allocation7 + $0x3b8] sm:$0xff] }
 0x172   :  { %v509_v53 = vadd.f32 %v508_v47, %v3161_v48  ;;  %1538 = vmatprep.mubr.f32.mxu0 %v1093_v36  ;;  %1023 = vmatprep.mubr.f32.mxu1 %v2802_v17  ;;  %v2494_v1 = vpack.c.bf16 %v1279_v59, %v1277_v32  ;;  %v1281_v47 = vld [vmem:[#allocation7 + $0x3a8] sm:$0xff] }
 0x173   :  { %1539 = vmatmul.mubr.f32.gmra.mrb[14].mxu0 %v1092_v60  ;;  %v1100_v25 = vmax.f32 %v507_v39, 0.0  ;;  %v1278_v60 = vld [vmem:[#allocation7 + $0x390] sm:$0xff]  ;;  %v2498_v62 = vpack.c.bf16 %v1283_v45, %v1281_v47  ;;  %v1296_v47 = vld [vmem:[#allocation7 + $0x420] sm:$0xff] }
 0x174   :  { %v1101_v19 = vmax.f32 %v509_v53, 0.0  ;;  %v512_v63 = vpop.f32.mrb[18].mxu1  ;;  %2477 = vmatpush1.bf16.msra.mxu0 %v2476_v55  ;;  %v1276_v55 = vld [vmem:[#allocation7 + $0x380] sm:$0xff]  ;;  %v1298_v45 = vld [vmem:[#allocation7 + $0x430] sm:$0xff] }
 0x175   :  { %v513_v41 = vadd.f32 %v512_v63, %v3156_v9  ;;  %v514_v2 = vpop.f32.mrb[19].mxu1  ;;  %1024 = vmatmul.mubr.f32.gmra.mrb[124].mxu1 %v2803_v27  ;;  %2479 = vmatprep.subr.bf16.mxu0 %v2478_v46  ;;  %v2496_v50 = vpack.c.bf16 %v1278_v60, %v1276_v55  ;;  %v1282_v63 = vld [vmem:[#allocation7 + $0x3b0] sm:$0xff] }
 0x176   :  { %v515_v6 = vadd.f32 %v514_v2, %v3161_v48  ;;  %1544 = vmatprep.mubr.f32.mxu0 %v1101_v19  ;;  %1029 = vmatprep.mubr.f32.mxu1 %v2804_v7  ;;  %v1280_v19 = vld [vmem:[#allocation7 + $0x3a0] sm:$0xff] }
 0x177   :  { %1545 = vmatmul.mubr.f32.gmra.mrb[16].mxu0 %v1100_v25  ;;  %v1108_v16 = vmax.f32 %v513_v41, 0.0  ;;  %v1285_v25 = vld [vmem:[#allocation7 + $0x3c8] sm:$0xff]  ;;  %v1287_v41 = vld [vmem:[#allocation7 + $0x3d8] sm:$0xff] }
 0x178   :  { %v1109_v14 = vmax.f32 %v515_v6, 0.0  ;;  %v518_v58 = vpop.f32.mrb[20].mxu1  ;;  %2481 = vmatpush1.bf16.msra.mxu0 %v2480_v0  ;;  %v2502_v7 = vpack.c.bf16 %v1287_v41, %v1285_v25  ;;  %v1300_v25 = vld [vmem:[#allocation7 + $0x440] sm:$0xff]  ;;  %v1302_v41 = vld [vmem:[#allocation7 + $0x450] sm:$0xff] }
 0x179   :  { %v519_v61 = vadd.f32 %v518_v58, %v3156_v9  ;;  %v520_v20 = vpop.f32.mrb[21].mxu1  ;;  %1030 = vmatmul.mubr.f32.gmra.mrb[126].mxu1 %v2805_v43  ;;  %2483 = vmatprep.subr.bf16.mxu0 %v2482_v4  ;;  %v2500_v4 = vpack.c.bf16 %v1282_v63, %v1280_v19 }
 0x17a   :  { %v521_v15 = vadd.f32 %v520_v20, %v3161_v48  ;;  %1550 = vmatprep.mubr.f32.mxu0 %v1109_v14  ;;  %v1286_v14 = vld [vmem:[#allocation7 + $0x3d0] sm:$0xff] }
 0x17b   :  { %1551 = vmatmul.mubr.f32.gmra.mrb[18].mxu0 %v1108_v16  ;;  %v1116_v33 = vmax.f32 %v519_v61, 0.0  ;;  %v1289_v16 = vld [vmem:[#allocation7 + $0x3e8] sm:$0xff]  ;;  %v1291_v61 = vld [vmem:[#allocation7 + $0x3f8] sm:$0xff] }
 0x17c   :  { %v1117_v31 = vmax.f32 %v521_v15, 0.0  ;;  %v524_v24 = vpop.f32.mrb[22].mxu1  ;;  %2485 = vmatpush1.bf16.msra.mxu0 %v2484_v40  ;;  %v366_v40 = vsub.s32 3, %v3144_v37  ;;  %v2506_v23 = vpack.c.bf16 %v1291_v61, %v1289_v16  ;;  %v1309_v61 = vld [vmem:[#allocation7 + $0x488] sm:$0xff] }
 0x17d   :  { %v525_v26 = vadd.f32 %v524_v24, %v3156_v9  ;;  %v526_v28 = vpop.f32.mrb[23].mxu1  ;;  %2487 = vmatprep.subr.bf16.mxu0 %v2486_v13  ;;  %v2504_v13 = vpack.c.bf16 %v1286_v14, %v1284_v10  ;;  %v1290_v24 = vld [vmem:[#allocation7 + $0x3f0] sm:$0xff] }
 0x17e   :  { %v527_v54 = vadd.f32 %v526_v28, %v3161_v48  ;;  %1556 = vmatprep.mubr.f32.mxu0 %v1117_v31  ;;  %v1288_v31 = vld [vmem:[#allocation7 + $0x3e0] sm:$0xff]  ;;  %v1295_v28 = vld [vmem:[#allocation7 + $0x418] sm:$0xff] }
 0x17f   :  { %1557 = vmatmul.mubr.f32.gmra.mrb[20].mxu0 %v1116_v33  ;;  %v1124_v34 = vmax.f32 %v525_v26, 0.0  ;;  %v3201_v33 = vrot.slane %v3150_v3, %v366_v40  ;;  %v1293_v26 = vld [vmem:[#allocation7 + $0x408] sm:$0xff]  ;;  %v1306_v40 = vld [vmem:[#allocation7 + $0x470] sm:$0xff] }
 0x180   :  { %v1125_v8 = vmax.f32 %v527_v54, 0.0  ;;  %v530_v12 = vpop.f32.mrb[24].mxu1  ;;  %2489 = vmatpush1.bf16.msra.mxu0 %v2488_v51  ;;  %v2510_v59 = vpack.c.bf16 %v1295_v28, %v1293_v26  ;;  %v1297_v3 = vld [vmem:[#allocation7 + $0x428] sm:$0xff] }
 0x181   :  { %v531_v35 = vadd.f32 %v530_v12, %v3156_v9  ;;  %v532_v36 = vpop.f32.mrb[25].mxu1  ;;  %2491 = vmatprep.subr.bf16.mxu0 %v2490_v52  ;;  %v1294_v12 = vld [vmem:[#allocation7 + $0x410] sm:$0xff]  ;;  %v1313_v28 = vld [vmem:[#allocation7 + $0x4a8] sm:$0xff] }
 0x182   :  { %v533_v39 = vadd.f32 %v532_v36, %v3161_v48  ;;  %1562 = vmatprep.mubr.f32.mxu0 %v1125_v8  ;;  %v1292_v8 = vld [vmem:[#allocation7 + $0x400] sm:$0xff] }
 0x183   :  { %1563 = vmatmul.mubr.f32.gmra.mrb[22].mxu0 %v1124_v34  ;;  %v1132_v53 = vmax.f32 %v531_v35, 0.0  ;;  %v2512_v36 = vpack.c.bf16 %v1294_v12, %v1292_v8  ;;  %v1312_v12 = vld [vmem:[#allocation7 + $0x4a0] sm:$0xff] }
 0x184   :  { %v1133_v46 = vmax.f32 %v533_v39, 0.0  ;;  %v536_v11 = vpop.f32.mrb[26].mxu1  ;;  %2493 = vmatpush1.bf16.msra.mxu0 %v2492_v30  ;;  %v1299_v30 = vld [vmem:[#allocation7 + $0x438] sm:$0xff] }
 0x185   :  { %v537_v17 = vadd.f32 %v536_v11, %v3156_v9  ;;  %v538_v56 = vpop.f32.mrb[27].mxu1  ;;  %2495 = vmatprep.subr.bf16.mxu0 %v2494_v1  ;;  %v2514_v39 = vpack.c.bf16 %v1299_v30, %v1297_v3  ;;  %v1301_v11 = vld [vmem:[#allocation7 + $0x448] sm:$0xff] }
 0x186   :  { %v539_v0 = vadd.f32 %v538_v56, %v3161_v48  ;;  %1568 = vmatprep.mubr.f32.mxu0 %v1133_v46  ;;  %v2516_v56 = vpack.c.bf16 %v1298_v45, %v1296_v47  ;;  %v1317_v30 = vld [vmem:[#allocation7 + $0x4c8] sm:$0xff]  ;;  %v1316_v45 = vld [vmem:[#allocation7 + $0x4c0] sm:$0xff] }
 0x187   :  { %1569 = vmatmul.mubr.f32.gmra.mrb[24].mxu0 %v1132_v53  ;;  %v1140_v5 = vmax.f32 %v537_v17, 0.0 }
 0x188   :  { %v1141_v2 = vmax.f32 %v539_v0, 0.0  ;;  %v542_v27 = vpop.f32.mrb[28].mxu1  ;;  %2497 = vmatpush1.bf16.msra.mxu0 %v2496_v50  ;;  %v1303_v50 = vld [vmem:[#allocation7 + $0x458] sm:$0xff] }
 0x189   :  { %v543_v38 = vadd.f32 %v542_v27, %v3156_v9  ;;  %v544_v6 = vpop.f32.mrb[29].mxu1  ;;  %2499 = vmatprep.subr.bf16.mxu0 %v2498_v62  ;;  %v2518_v0 = vpack.c.bf16 %v1303_v50, %v1301_v11  ;;  %v1305_v27 = vld [vmem:[#allocation7 + $0x468] sm:$0xff] }
 0x18a   :  { %v545_v58 = vadd.f32 %v544_v6, %v3161_v48  ;;  %1574 = vmatprep.mubr.f32.mxu0 %v1141_v2  ;;  %v2520_v6 = vpack.c.bf16 %v1302_v41, %v1300_v25  ;;  %v1321_v50 = vld [vmem:[#allocation7 + $0x4e8] sm:$0xff]  ;;  %v1320_v41 = vld [vmem:[#allocation7 + $0x4e0] sm:$0xff] }
 0x18b   :  { %1575 = vmatmul.mubr.f32.gmra.mrb[26].mxu0 %v1140_v5  ;;  %v1148_v21 = vmax.f32 %v543_v38, 0.0 }
 0x18c   :  { %v1149_v20 = vmax.f32 %v545_v58, 0.0  ;;  %v548_v43 = vpop.f32.mrb[30].mxu1  ;;  %2501 = vmatpush1.bf16.msra.mxu0 %v2500_v4  ;;  %v1307_v4 = vld [vmem:[#allocation7 + $0x478] sm:$0xff]  ;;  %v1304_v58 = vld [vmem:[#allocation7 + $0x460] sm:$0xff] }
 0x18d   :  { %v549_v22 = vadd.f32 %v548_v43, %v3156_v9  ;;  %v550_v15 = vpop.f32.mrb[31].mxu1  ;;  %2503 = vmatprep.subr.bf16.mxu0 %v2502_v7  ;;  %v2508_v9 = vpack.c.bf16 %v1290_v24, %v1288_v31  ;;  %v2522_v14 = vpack.c.bf16 %v1307_v4, %v1305_v27  ;;  %v1308_v24 = vld [vmem:[#allocation7 + $0x480] sm:$0xff]  ;;  %v1325_v4 = vld [vmem:[#allocation7 + $0x508] sm:$0xff] }
 0x18e   :  { %v551_v51 = vadd.f32 %v550_v15, %v3161_v48  ;;  %1580 = vmatprep.mubr.f32.mxu0 %v1149_v20  ;;  %v1311_v20 = vld [vmem:[#allocation7 + $0x498] sm:$0xff] }
 0x18f   :  { %1581 = vmatmul.mubr.f32.gmra.mrb[28].mxu0 %v1148_v21  ;;  %v1156_v29 = vmax.f32 %v549_v22, 0.0  ;;  %v2524_v21 = vpack.c.bf16 %v1306_v40, %v1304_v58  ;;  %v2526_v31 = vpack.c.bf16 %v1311_v20, %v1309_v61  ;;  %v1324_v40 = vld [vmem:[#allocation7 + $0x500] sm:$0xff]  ;;  %v1329_v20 = vld [vmem:[#allocation7 + $0x528] sm:$0xff] }
 0x190   :  { %v1157_v52 = vmax.f32 %v551_v51, 0.0  ;;  %v619_v57 = vpop.f32.mrb[32].mxu1  ;;  %2505 = vmatpush1.bf16.msra.mxu0 %v2504_v13  ;;  %v1310_v51 = vld [vmem:[#allocation7 + $0x490] sm:$0xff] }
 0x191   :  { %v620_v54 = vadd.f32 %v619_v57, %v3197_v49  ;;  %v621_v32 = vpop.f32.mrb[33].mxu1  ;;  %2507 = vmatprep.subr.bf16.mxu0 %v2506_v23 }
 0x192   :  { %v622_v48 = vadd.f32 %v621_v32, %v3201_v33  ;;  %1586 = vmatprep.mubr.f32.mxu0 %v1157_v52  ;;  %v1315_v52 = vld [vmem:[#allocation7 + $0x4b8] sm:$0xff] }
 0x193   :  { %1587 = vmatmul.mubr.f32.gmra.mrb[30].mxu0 %v1156_v29  ;;  %v1038_v1 = vmax.f32 %v620_v54, 0.0  ;;  %v2528_v29 = vpack.c.bf16 %v1310_v51, %v1308_v24  ;;  %v2530_v8 = vpack.c.bf16 %v1315_v52, %v1313_v28  ;;  %v1328_v51 = vld [vmem:[#allocation7 + $0x520] sm:$0xff]  ;;  %v1333_v52 = vld [vmem:[#allocation7 + $0x548] sm:$0xff] }
 0x194   :  { %v1039_v34 = vmax.f32 %v622_v48, 0.0  ;;  %v625_v35 = vpop.f32.mrb[34].mxu1  ;;  %2509 = vmatpush1.bf16.msra.mxu0 %v2508_v9  ;;  %v1314_v48 = vld [vmem:[#allocation7 + $0x4b0] sm:$0xff] }
 0x195   :  { %v626_v55 = vadd.f32 %v625_v35, %v3197_v49  ;;  %v627_v60 = vpop.f32.mrb[35].mxu1  ;;  %2511 = vmatprep.subr.bf16.mxu0 %v2510_v59 }
 0x196   :  { %v628_v46 = vadd.f32 %v627_v60, %v3201_v33  ;;  %1657 = vmatprep.mubr.f32.mxu0 %v1039_v34  ;;  %v1319_v34 = vld [vmem:[#allocation7 + $0x4d8] sm:$0xff] }
 0x197   :  { %1658 = vmatmul.mubr.f32.vlgmr.msra.gmra.mrb[0].mxu0 %v1038_v1  ;;  %v1046_v62 = vmax.f32 %v626_v55, 0.0  ;;  %v2532_v1 = vpack.c.bf16 %v1314_v48, %v1312_v12  ;;  %v2534_v47 = vpack.c.bf16 %v1319_v34, %v1317_v30  ;;  %v1332_v48 = vld [vmem:[#allocation7 + $0x540] sm:$0xff]  ;;  %v1337_v34 = vld [vmem:[#allocation7 + $0x568] sm:$0xff] }
 0x198   :  { %v1047_v53 = vmax.f32 %v628_v46, 0.0  ;;  %v631_v17 = vpop.f32.mrb[36].mxu1  ;;  %2513 = vmatpush1.bf16.msra.mxu0 %v2512_v36  ;;  %v1318_v46 = vld [vmem:[#allocation7 + $0x4d0] sm:$0xff] }
 0x199   :  { %v632_v19 = vadd.f32 %v631_v17, %v3197_v49  ;;  %v633_v63 = vpop.f32.mrb[37].mxu1  ;;  %2515 = vmatprep.subr.bf16.mxu0 %v2514_v39 }
 0x19a   :  { %v634_v2 = vadd.f32 %v633_v63, %v3201_v33  ;;  %1663 = vmatprep.mubr.f32.mxu0 %v1047_v53  ;;  %v1323_v53 = vld [vmem:[#allocation7 + $0x4f8] sm:$0xff] }
 0x19b   :  { %1664 = vmatmul.mubr.f32.gmra.mrb[2].mxu0 %v1046_v62  ;;  %v1054_v7 = vmax.f32 %v632_v19, 0.0  ;;  %v2536_v62 = vpack.c.bf16 %v1318_v46, %v1316_v45  ;;  %v2538_v25 = vpack.c.bf16 %v1323_v53, %v1321_v50  ;;  %v1336_v46 = vld [vmem:[#allocation7 + $0x560] sm:$0xff]  ;;  %v1341_v53 = vld [vmem:[#allocation7 + $0x588] sm:$0xff] }
 0x19c   :  { %v1055_v5 = vmax.f32 %v634_v2, 0.0  ;;  %v637_v38 = vpop.f32.mrb[38].mxu1  ;;  %2517 = vmatpush1.bf16.msra.mxu0 %v2516_v56  ;;  %v1322_v2 = vld [vmem:[#allocation7 + $0x4f0] sm:$0xff] }
 0x19d   :  { %v638_v42 = vadd.f32 %v637_v38, %v3197_v49  ;;  %v639_v10 = vpop.f32.mrb[39].mxu1  ;;  %2519 = vmatprep.subr.bf16.mxu0 %v2518_v0 }
 0x19e   :  { %v640_v16 = vadd.f32 %v639_v10, %v3201_v33  ;;  %1669 = vmatprep.mubr.f32.mxu0 %v1055_v5  ;;  %v1327_v5 = vld [vmem:[#allocation7 + $0x518] sm:$0xff] }
 0x19f   :  { %1670 = vmatmul.mubr.f32.gmra.mrb[4].mxu0 %v1054_v7  ;;  %v1062_v22 = vmax.f32 %v638_v42, 0.0  ;;  %v2540_v7 = vpack.c.bf16 %v1322_v2, %v1320_v41  ;;  %v2542_v58 = vpack.c.bf16 %v1327_v5, %v1325_v4  ;;  %v1340_v2 = vld [vmem:[#allocation7 + $0x580] sm:$0xff]  ;;  %v1345_v5 = vld [vmem:[#allocation7 + $0x5a8] sm:$0xff] }
 0x1a0   :  { %v1063_v43 = vmax.f32 %v640_v16, 0.0  ;;  %v643_v13 = vpop.f32.mrb[40].mxu1  ;;  %2521 = vmatpush1.bf16.msra.mxu0 %v2520_v6  ;;  %v1326_v16 = vld [vmem:[#allocation7 + $0x510] sm:$0xff] }
 0x1a1   :  { %v644_v15 = vadd.f32 %v643_v13, %v3197_v49  ;;  %v645_v23 = vpop.f32.mrb[41].mxu1  ;;  %2523 = vmatprep.subr.bf16.mxu0 %v2522_v14 }
 0x1a2   :  { %v646_v26 = vadd.f32 %v645_v23, %v3201_v33  ;;  %1675 = vmatprep.mubr.f32.mxu0 %v1063_v43  ;;  %v1331_v43 = vld [vmem:[#allocation7 + $0x538] sm:$0xff] }
 0x1a3   :  { %1676 = vmatmul.mubr.f32.gmra.mrb[6].mxu0 %v1062_v22  ;;  %v1070_v54 = vmax.f32 %v644_v15, 0.0  ;;  %v2544_v22 = vpack.c.bf16 %v1326_v16, %v1324_v40  ;;  %v2546_v24 = vpack.c.bf16 %v1331_v43, %v1329_v20  ;;  %v1344_v16 = vld [vmem:[#allocation7 + $0x5a0] sm:$0xff]  ;;  %v1349_v43 = vld [vmem:[#allocation7 + $0x5c8] sm:$0xff] }
 0x1a4   :  { %v1071_v57 = vmax.f32 %v646_v26, 0.0  ;;  %v649_v9 = vpop.f32.mrb[42].mxu1  ;;  %2525 = vmatpush1.bf16.msra.mxu0 %v2524_v21  ;;  %v1330_v26 = vld [vmem:[#allocation7 + $0x530] sm:$0xff] }
 0x1a5   :  { %v650_v32 = vadd.f32 %v649_v9, %v3197_v49  ;;  %v651_v59 = vpop.f32.mrb[43].mxu1  ;;  %2527 = vmatprep.subr.bf16.mxu0 %v2526_v31 }
 0x1a6   :  { %v652_v3 = vadd.f32 %v651_v59, %v3201_v33  ;;  %1681 = vmatprep.mubr.f32.mxu0 %v1071_v57  ;;  %v1335_v57 = vld [vmem:[#allocation7 + $0x558] sm:$0xff] }
 0x1a7   :  { %1682 = vmatmul.mubr.f32.gmra.mrb[8].mxu0 %v1070_v54  ;;  %v1078_v55 = vmax.f32 %v650_v32, 0.0  ;;  %v2548_v54 = vpack.c.bf16 %v1330_v26, %v1328_v51  ;;  %v2550_v12 = vpack.c.bf16 %v1335_v57, %v1333_v52  ;;  %v370_v26 = vsub.s32 4, %v3144_v37  ;;  %v1350_v52 = vld [vmem:[#allocation7 + $0x5d0] sm:$0xff] }
 0x1a8   :  { %v1079_v35 = vmax.f32 %v652_v3, 0.0  ;;  %v655_v36 = vpop.f32.mrb[44].mxu1  ;;  %2529 = vmatpush1.bf16.msra.mxu0 %v2528_v29  ;;  %v1334_v3 = vld [vmem:[#allocation7 + $0x550] sm:$0xff] }
 0x1a9   :  { %v656_v60 = vadd.f32 %v655_v36, %v3197_v49  ;;  %v657_v39 = vpop.f32.mrb[45].mxu1  ;;  %2531 = vmatprep.subr.bf16.mxu0 %v2530_v8 }
 0x1aa   :  { %v658_v11 = vadd.f32 %v657_v39, %v3201_v33  ;;  %1687 = vmatprep.mubr.f32.mxu0 %v1079_v35  ;;  %v1339_v35 = vld [vmem:[#allocation7 + $0x578] sm:$0xff] }
 0x1ab   :  { %1688 = vmatmul.mubr.f32.gmra.mrb[10].mxu0 %v1078_v55  ;;  %v1086_v19 = vmax.f32 %v656_v60, 0.0  ;;  %v2552_v55 = vpack.c.bf16 %v1334_v3, %v1332_v48  ;;  %v2554_v45 = vpack.c.bf16 %v1339_v35, %v1337_v34 }
 0x1ac   :  { %v1087_v17 = vmax.f32 %v658_v11, 0.0  ;;  %v661_v56 = vpop.f32.mrb[46].mxu1  ;;  %2533 = vmatpush1.bf16.msra.mxu0 %v2532_v1  ;;  %v1338_v11 = vld [vmem:[#allocation7 + $0x570] sm:$0xff] }
 0x1ad   :  { %v662_v63 = vadd.f32 %v661_v56, %v3197_v49  ;;  %v663_v0 = vpop.f32.mrb[47].mxu1  ;;  %2535 = vmatprep.subr.bf16.mxu0 %v2534_v47 }
 0x1ae   :  { %v664_v27 = vadd.f32 %v663_v0, %v3201_v33  ;;  %1693 = vmatprep.mubr.f32.mxu0 %v1087_v17  ;;  %v1343_v17 = vld [vmem:[#allocation7 + $0x598] sm:$0xff] }
 0x1af   :  { %1694 = vmatmul.mubr.f32.gmra.mrb[12].mxu0 %v1086_v19  ;;  %v1094_v42 = vmax.f32 %v662_v63, 0.0  ;;  %v2556_v19 = vpack.c.bf16 %v1338_v11, %v1336_v46  ;;  %v2558_v41 = vpack.c.bf16 %v1343_v17, %v1341_v53 }
 0x1b0   :  { %v1095_v38 = vmax.f32 %v664_v27, 0.0  ;;  %v667_v6 = vpop.f32.mrb[48].mxu1  ;;  %2537 = vmatpush1.bf16.msra.mxu0 %v2536_v62  ;;  %v1342_v27 = vld [vmem:[#allocation7 + $0x590] sm:$0xff] }
 0x1b1   :  { %v668_v10 = vadd.f32 %v667_v6, %v3197_v49  ;;  %v669_v14 = vpop.f32.mrb[49].mxu1  ;;  %2539 = vmatprep.subr.bf16.mxu0 %v2538_v25 }
 0x1b2   :  { %v670_v61 = vadd.f32 %v669_v14, %v3201_v33  ;;  %1699 = vmatprep.mubr.f32.mxu0 %v1095_v38  ;;  %v1347_v38 = vld [vmem:[#allocation7 + $0x5b8] sm:$0xff] }
 0x1b3   :  { %1700 = vmatmul.mubr.f32.gmra.mrb[14].mxu0 %v1094_v42  ;;  %v1102_v15 = vmax.f32 %v668_v10, 0.0  ;;  %v2560_v42 = vpack.c.bf16 %v1342_v27, %v1340_v2  ;;  %v2562_v40 = vpack.c.bf16 %v1347_v38, %v1345_v5  ;;  %v1360_v38 = vld [vmem:[#allocation7 + $0x620] sm:$0xff] }
 0x1b4   :  { %v1103_v13 = vmax.f32 %v670_v61, 0.0  ;;  %v673_v21 = vpop.f32.mrb[50].mxu1  ;;  %2541 = vmatpush1.bf16.msra.mxu0 %v2540_v7  ;;  %v1346_v61 = vld [vmem:[#allocation7 + $0x5b0] sm:$0xff] }
 0x1b5   :  { %v674_v23 = vadd.f32 %v673_v21, %v3197_v49  ;;  %v675_v31 = vpop.f32.mrb[51].mxu1  ;;  %2543 = vmatprep.subr.bf16.mxu0 %v2542_v58 }
 0x1b6   :  { %v676_v28 = vadd.f32 %v675_v31, %v3201_v33  ;;  %1705 = vmatprep.mubr.f32.mxu0 %v1103_v13  ;;  %v1351_v13 = vld [vmem:[#allocation7 + $0x5d8] sm:$0xff] }
 0x1b7   :  { %1706 = vmatmul.mubr.f32.gmra.mrb[16].mxu0 %v1102_v15  ;;  %v1110_v32 = vmax.f32 %v674_v23, 0.0  ;;  %v2564_v15 = vpack.c.bf16 %v1346_v61, %v1344_v16  ;;  %v2566_v51 = vpack.c.bf16 %v1351_v13, %v1349_v43  ;;  %v1364_v13 = vld [vmem:[#allocation7 + $0x640] sm:$0xff] }
 0x1b8   :  { %v1111_v9 = vmax.f32 %v676_v28, 0.0  ;;  %v679_v29 = vpop.f32.mrb[52].mxu1  ;;  %2545 = vmatpush1.bf16.msra.mxu0 %v2544_v22  ;;  %v1348_v28 = vld [vmem:[#allocation7 + $0x5c0] sm:$0xff] }
 0x1b9   :  { %v680_v59 = vadd.f32 %v679_v29, %v3197_v49  ;;  %v681_v8 = vpop.f32.mrb[53].mxu1  ;;  %2547 = vmatprep.subr.bf16.mxu0 %v2546_v24  ;;  %v1353_v29 = vld [vmem:[#allocation7 + $0x5e8] sm:$0xff] }
 0x1ba   :  { %v682_v30 = vadd.f32 %v681_v8, %v3201_v33  ;;  %1711 = vmatprep.mubr.f32.mxu0 %v1111_v9  ;;  %v374_v9 = vsub.s32 5, %v3144_v37  ;;  %v2568_v8 = vpack.c.bf16 %v1350_v52, %v1348_v28 }
 0x1bb   :  { %1712 = vmatmul.mubr.f32.gmra.mrb[18].mxu0 %v1110_v32  ;;  %v1118_v60 = vmax.f32 %v680_v59, 0.0 }
 0x1bc   :  { %v1119_v36 = vmax.f32 %v682_v30, 0.0  ;;  %v685_v1 = vpop.f32.mrb[54].mxu1  ;;  %2549 = vmatpush1.bf16.msra.mxu0 %v2548_v54  ;;  %v1355_v54 = vld [vmem:[#allocation7 + $0x5f8] sm:$0xff]  ;;  %v3239_v30 = vld [vmem:[%s3380_s2] sm:$0xff] }
 0x1bd   :  { %v686_v39 = vadd.f32 %v685_v1, %v3197_v49  ;;  %v687_v47 = vpop.f32.mrb[55].mxu1  ;;  %2551 = vmatprep.subr.bf16.mxu0 %v2550_v12  ;;  %v3242_v34 = vrot.slane %v3239_v30, %v370_v26  ;;  %v2570_v35 = vpack.c.bf16 %v1355_v54, %v1353_v29  ;;  %v1354_v1 = vld [vmem:[#allocation7 + $0x5f0] sm:$0xff] }
 0x1be   :  { %v688_v50 = vadd.f32 %v687_v47, %v3201_v33  ;;  %1717 = vmatprep.mubr.f32.mxu0 %v1119_v36  ;;  %v1352_v36 = vld [vmem:[#allocation7 + $0x5e0] sm:$0xff]  ;;  %v1370_v29 = vld [vmem:[#allocation7 + $0x670] sm:$0xff] }
 0x1bf   :  { %1718 = vmatmul.mubr.f32.gmra.mrb[20].mxu0 %v1118_v60  ;;  %v1126_v63 = vmax.f32 %v686_v39, 0.0  ;;  %v3246_v60 = vrot.slane %v3239_v30, %v374_v9  ;;  %v1359_v39 = vld [vmem:[#allocation7 + $0x618] sm:$0xff]  ;;  %v2572_v46 = vpack.c.bf16 %v1354_v1, %v1352_v36  ;;  %v1368_v9 = vld [vmem:[#allocation7 + $0x660] sm:$0xff] }
 0x1c0   :  { %v1127_v56 = vmax.f32 %v688_v50, 0.0  ;;  %v691_v62 = vpop.f32.mrb[56].mxu1  ;;  %2553 = vmatpush1.bf16.msra.mxu0 %v2552_v55 }
 0x1c1   :  { %v692_v0 = vadd.f32 %v691_v62, %v3197_v49  ;;  %v693_v25 = vpop.f32.mrb[57].mxu1  ;;  %2555 = vmatprep.subr.bf16.mxu0 %v2554_v45  ;;  %v1358_v62 = vld [vmem:[#allocation7 + $0x610] sm:$0xff] }
 0x1c2   :  { %v694_v4 = vadd.f32 %v693_v25, %v3201_v33  ;;  %1723 = vmatprep.mubr.f32.mxu0 %v1127_v56  ;;  %v1356_v56 = vld [vmem:[#allocation7 + $0x600] sm:$0xff] }
 0x1c3   :  { %1724 = vmatmul.mubr.f32.gmra.mrb[22].mxu0 %v1126_v63  ;;  %v1134_v10 = vmax.f32 %v692_v0, 0.0  ;;  %v1363_v63 = vld [vmem:[#allocation7 + $0x638] sm:$0xff] }
 0x1c4   :  { %v1135_v6 = vmax.f32 %v694_v4, 0.0  ;;  %v697_v7 = vpop.f32.mrb[58].mxu1  ;;  %2557 = vmatpush1.bf16.msra.mxu0 %v2556_v19  ;;  %v1361_v19 = vld [vmem:[#allocation7 + $0x628] sm:$0xff] }
 0x1c5   :  { %v698_v14 = vadd.f32 %v697_v7, %v3197_v49  ;;  %v699_v58 = vpop.f32.mrb[59].mxu1  ;;  %2559 = vmatprep.subr.bf16.mxu0 %v2558_v41  ;;  %v2576_v41 = vpack.c.bf16 %v1358_v62, %v1356_v56  ;;  %v2578_v5 = vpack.c.bf16 %v1363_v63, %v1361_v19  ;;  %v1378_v19 = vld [vmem:[#allocation7 + $0x6b0] sm:$0xff] }
 0x1c6   :  { %v700_v20 = vadd.f32 %v699_v58, %v3201_v33  ;;  %1729 = vmatprep.mubr.f32.mxu0 %v1135_v6  ;;  %v1362_v6 = vld [vmem:[#allocation7 + $0x630] sm:$0xff] }
 0x1c7   :  { %1730 = vmatmul.mubr.f32.gmra.mrb[24].mxu0 %v1134_v10  ;;  %v1142_v23 = vmax.f32 %v698_v14, 0.0  ;;  %v1367_v10 = vld [vmem:[#allocation7 + $0x658] sm:$0xff] }
 0x1c8   :  { %v1143_v21 = vmax.f32 %v700_v20, 0.0  ;;  %v703_v22 = vpop.f32.mrb[60].mxu1  ;;  %2561 = vmatpush1.bf16.msra.mxu0 %v2560_v42  ;;  %v1365_v42 = vld [vmem:[#allocation7 + $0x648] sm:$0xff] }
 0x1c9   :  { %v704_v31 = vadd.f32 %v703_v22, %v3197_v49  ;;  %v705_v24 = vpop.f32.mrb[61].mxu1  ;;  %2563 = vmatprep.subr.bf16.mxu0 %v2562_v40  ;;  %v2580_v40 = vpack.c.bf16 %v1362_v6, %v1360_v38  ;;  %v2582_v43 = vpack.c.bf16 %v1367_v10, %v1365_v42  ;;  %v1382_v42 = vld [vmem:[#allocation7 + $0x6d0] sm:$0xff] }
 0x1ca   :  { %v706_v57 = vadd.f32 %v705_v24, %v3201_v33  ;;  %1735 = vmatprep.mubr.f32.mxu0 %v1143_v21  ;;  %v1366_v21 = vld [vmem:[#allocation7 + $0x650] sm:$0xff] }
 0x1cb   :  { %1736 = vmatmul.mubr.f32.gmra.mrb[26].mxu0 %v1142_v23  ;;  %v1150_v12 = vmax.f32 %v704_v31, 0.0  ;;  %v1371_v23 = vld [vmem:[#allocation7 + $0x678] sm:$0xff] }
 0x1cc   :  { %v1151_v32 = vmax.f32 %v706_v57, 0.0  ;;  %v709_v59 = vpop.f32.mrb[62].mxu1  ;;  %2565 = vmatpush1.bf16.msra.mxu0 %v2564_v15  ;;  %v1369_v15 = vld [vmem:[#allocation7 + $0x668] sm:$0xff] }
 0x1cd   :  { %v710_v48 = vadd.f32 %v709_v59, %v3197_v49  ;;  %v711_v3 = vpop.f32.mrb[63].mxu1  ;;  %2567 = vmatprep.subr.bf16.mxu0 %v2566_v51  ;;  %v1357_v49 = vld [vmem:[#allocation7 + $0x608] sm:$0xff]  ;;  %v2584_v51 = vpack.c.bf16 %v1366_v21, %v1364_v13  ;;  %v2586_v57 = vpack.c.bf16 %v1371_v23, %v1369_v15  ;;  %v1375_v59 = vld [vmem:[#allocation7 + $0x698] sm:$0xff]  ;;  %v1386_v15 = vld [vmem:[#allocation7 + $0x6f0] sm:$0xff] }
 0x1ce   :  { %v712_v55 = vadd.f32 %v711_v3, %v3201_v33  ;;  %1741 = vmatprep.mubr.f32.mxu0 %v1151_v32  ;;  %v2574_v17 = vpack.c.bf16 %v1359_v39, %v1357_v49  ;;  %v1373_v32 = vld [vmem:[#allocation7 + $0x688] sm:$0xff]  ;;  %v1374_v49 = vld [vmem:[#allocation7 + $0x690] sm:$0xff] }
 0x1cf   :  { %1742 = vmatmul.mubr.f32.gmra.mrb[28].mxu0 %v1150_v12  ;;  %v1158_v11 = vmax.f32 %v710_v48, 0.0  ;;  %v2588_v48 = vpack.c.bf16 %v1370_v29, %v1368_v9  ;;  %v2590_v1 = vpack.c.bf16 %v1375_v59, %v1373_v32  ;;  %v1390_v32 = vld [vmem:[#allocation7 + $0x710] sm:$0xff] }
 0x1d0   :  { %v1159_v47 = vmax.f32 %v712_v55, 0.0  ;;  %v780_v45 = vpop.f32.mrb[64].mxu1  ;;  %2569 = vmatpush1.bf16.msra.mxu0 %v2568_v8  ;;  %v1372_v55 = vld [vmem:[#allocation7 + $0x680] sm:$0xff] }
 0x1d1   :  { %v781_v50 = vadd.f32 %v780_v45, %v3242_v34  ;;  %v782_v53 = vpop.f32.mrb[65].mxu1  ;;  %2571 = vmatprep.subr.bf16.mxu0 %v2570_v35  ;;  %v1379_v45 = vld [vmem:[#allocation7 + $0x6b8] sm:$0xff] }
 0x1d2   :  { %v783_v33 = vadd.f32 %v782_v53, %v3246_v60  ;;  %1747 = vmatprep.mubr.f32.mxu0 %v1159_v47  ;;  %v1377_v47 = vld [vmem:[#allocation7 + $0x6a8] sm:$0xff] }
 0x1d3   :  { %1748 = vmatmul.mubr.f32.gmra.mrb[30].mxu0 %v1158_v11  ;;  %v1040_v2 = vmax.f32 %v781_v50, 0.0  ;;  %v2592_v50 = vpack.c.bf16 %v1374_v49, %v1372_v55  ;;  %v2594_v62 = vpack.c.bf16 %v1379_v45, %v1377_v47  ;;  %v1394_v47 = vld [vmem:[#allocation7 + $0x730] sm:$0xff] }
 0x1d4   :  { %v1041_v0 = vmax.f32 %v783_v33, 0.0  ;;  %v786_v25 = vpop.f32.mrb[66].mxu1  ;;  %2573 = vmatpush1.bf16.msra.mxu0 %v2572_v46  ;;  %v1376_v33 = vld [vmem:[#allocation7 + $0x6a0] sm:$0xff] }
 0x1d5   :  { %v787_v27 = vadd.f32 %v786_v25, %v3242_v34  ;;  %v788_v4 = vpop.f32.mrb[67].mxu1  ;;  %2575 = vmatprep.subr.bf16.mxu0 %v2574_v17  ;;  %v1383_v25 = vld [vmem:[#allocation7 + $0x6d8] sm:$0xff] }
 0x1d6   :  { %v789_v7 = vadd.f32 %v788_v4, %v3246_v60  ;;  %1818 = vmatprep.mubr.f32.mxu0 %v1041_v0  ;;  %v1381_v0 = vld [vmem:[#allocation7 + $0x6c8] sm:$0xff] }
 0x1d7   :  { %1819 = vmatmul.mubr.f32.vlgmr.msra.gmra.mrb[0].mxu0 %v1040_v2  ;;  %v1048_v16 = vmax.f32 %v787_v27, 0.0  ;;  %v2596_v27 = vpack.c.bf16 %v1378_v19, %v1376_v33  ;;  %v2598_v6 = vpack.c.bf16 %v1383_v25, %v1381_v0  ;;  %v1398_v0 = vld [vmem:[#allocation7 + $0x750] sm:$0xff] }
 0x1d8   :  { %v1049_v14 = vmax.f32 %v789_v7, 0.0  ;;  %v792_v58 = vpop.f32.mrb[68].mxu1  ;;  %2577 = vmatpush1.bf16.msra.mxu0 %v2576_v41  ;;  %v1380_v7 = vld [vmem:[#allocation7 + $0x6c0] sm:$0xff] }
 0x1d9   :  { %v793_v61 = vadd.f32 %v792_v58, %v3242_v34  ;;  %v794_v20 = vpop.f32.mrb[69].mxu1  ;;  %2579 = vmatprep.subr.bf16.mxu0 %v2578_v5  ;;  %v1387_v58 = vld [vmem:[#allocation7 + $0x6f8] sm:$0xff] }
 0x1da   :  { %v795_v22 = vadd.f32 %v794_v20, %v3246_v60  ;;  %1824 = vmatprep.mubr.f32.mxu0 %v1049_v14  ;;  %v1385_v14 = vld [vmem:[#allocation7 + $0x6e8] sm:$0xff] }
 0x1db   :  { %1825 = vmatmul.mubr.f32.gmra.mrb[2].mxu0 %v1048_v16  ;;  %v1056_v26 = vmax.f32 %v793_v61, 0.0  ;;  %v2600_v61 = vpack.c.bf16 %v1382_v42, %v1380_v7  ;;  %v2602_v21 = vpack.c.bf16 %v1387_v58, %v1385_v14  ;;  %v1402_v14 = vld [vmem:[#allocation7 + $0x770] sm:$0xff] }
 0x1dc   :  { %v1057_v31 = vmax.f32 %v795_v22, 0.0  ;;  %v798_v24 = vpop.f32.mrb[70].mxu1  ;;  %2581 = vmatpush1.bf16.msra.mxu0 %v2580_v40  ;;  %v1384_v22 = vld [vmem:[#allocation7 + $0x6e0] sm:$0xff] }
 0x1dd   :  { %v799_v28 = vadd.f32 %v798_v24, %v3242_v34  ;;  %v800_v52 = vpop.f32.mrb[71].mxu1  ;;  %2583 = vmatprep.subr.bf16.mxu0 %v2582_v43  ;;  %v1391_v24 = vld [vmem:[#allocation7 + $0x718] sm:$0xff] }
 0x1de   :  { %v801_v54 = vadd.f32 %v800_v52, %v3246_v60  ;;  %1830 = vmatprep.mubr.f32.mxu0 %v1057_v31  ;;  %v1389_v31 = vld [vmem:[#allocation7 + $0x708] sm:$0xff] }
 0x1df   :  { %1831 = vmatmul.mubr.f32.gmra.mrb[4].mxu0 %v1056_v26  ;;  %v1064_v3 = vmax.f32 %v799_v28, 0.0  ;;  %v2604_v28 = vpack.c.bf16 %v1386_v15, %v1384_v22  ;;  %v2606_v29 = vpack.c.bf16 %v1391_v24, %v1389_v31  ;;  %v1406_v31 = vld [vmem:[#allocation7 + $0x790] sm:$0xff] }
 0x1e0   :  { %v1065_v8 = vmax.f32 %v801_v54, 0.0  ;;  %v804_v12 = vpop.f32.mrb[72].mxu1  ;;  %2585 = vmatpush1.bf16.msra.mxu0 %v2584_v51  ;;  %v1388_v54 = vld [vmem:[#allocation7 + $0x700] sm:$0xff] }
 0x1e1   :  { %v805_v35 = vadd.f32 %v804_v12, %v3242_v34  ;;  %v806_v36 = vpop.f32.mrb[73].mxu1  ;;  %2587 = vmatprep.subr.bf16.mxu0 %v2586_v57  ;;  %v1395_v12 = vld [vmem:[#allocation7 + $0x738] sm:$0xff] }
 0x1e2   :  { %v807_v39 = vadd.f32 %v806_v36, %v3246_v60  ;;  %1836 = vmatprep.mubr.f32.mxu0 %v1065_v8  ;;  %v1393_v8 = vld [vmem:[#allocation7 + $0x728] sm:$0xff] }
 0x1e3   :  { %1837 = vmatmul.mubr.f32.gmra.mrb[6].mxu0 %v1064_v3  ;;  %v1072_v53 = vmax.f32 %v805_v35, 0.0  ;;  %v2608_v35 = vpack.c.bf16 %v1390_v32, %v1388_v54  ;;  %v2610_v49 = vpack.c.bf16 %v1395_v12, %v1393_v8  ;;  %v1410_v8 = vld [vmem:[#allocation7 + $0x7b0] sm:$0xff] }
 0x1e4   :  { %v1073_v46 = vmax.f32 %v807_v39, 0.0  ;;  %v810_v11 = vpop.f32.mrb[74].mxu1  ;;  %2589 = vmatpush1.bf16.msra.mxu0 %v2588_v48  ;;  %v1392_v39 = vld [vmem:[#allocation7 + $0x720] sm:$0xff] }
 0x1e5   :  { %v811_v17 = vadd.f32 %v810_v11, %v3242_v34  ;;  %v812_v56 = vpop.f32.mrb[75].mxu1  ;;  %2591 = vmatprep.subr.bf16.mxu0 %v2590_v1  ;;  %v1399_v11 = vld [vmem:[#allocation7 + $0x758] sm:$0xff] }
 0x1e6   :  { %v813_v63 = vadd.f32 %v812_v56, %v3246_v60  ;;  %1842 = vmatprep.mubr.f32.mxu0 %v1073_v46  ;;  %v1397_v46 = vld [vmem:[#allocation7 + $0x748] sm:$0xff] }
 0x1e7   :  { %1843 = vmatmul.mubr.f32.gmra.mrb[8].mxu0 %v1072_v53  ;;  %v1080_v4 = vmax.f32 %v811_v17, 0.0  ;;  %v2612_v17 = vpack.c.bf16 %v1394_v47, %v1392_v39  ;;  %v2614_v19 = vpack.c.bf16 %v1399_v11, %v1397_v46  ;;  %v1412_v46 = vld [vmem:[#allocation7 + $0x7c0] sm:$0xff]  ;;  %v1414_v11 = vld [vmem:[#allocation7 + $0x7d0] sm:$0xff] }
 0x1e8   :  { %v1081_v41 = vmax.f32 %v813_v63, 0.0  ;;  %v816_v2 = vpop.f32.mrb[76].mxu1  ;;  %2593 = vmatpush1.bf16.msra.mxu0 %v2592_v50  ;;  %v1396_v63 = vld [vmem:[#allocation7 + $0x740] sm:$0xff] }
 0x1e9   :  { %v817_v5 = vadd.f32 %v816_v2, %v3242_v34  ;;  %v818_v38 = vpop.f32.mrb[77].mxu1  ;;  %2595 = vmatprep.subr.bf16.mxu0 %v2594_v62  ;;  %v1403_v2 = vld [vmem:[#allocation7 + $0x778] sm:$0xff] }
 0x1ea   :  { %v819_v10 = vadd.f32 %v818_v38, %v3246_v60  ;;  %1848 = vmatprep.mubr.f32.mxu0 %v1081_v41  ;;  %v1401_v41 = vld [vmem:[#allocation7 + $0x768] sm:$0xff] }
 0x1eb   :  { %1849 = vmatmul.mubr.f32.gmra.mrb[10].mxu0 %v1080_v4  ;;  %v1088_v20 = vmax.f32 %v817_v5, 0.0  ;;  %v2616_v5 = vpack.c.bf16 %v1398_v0, %v1396_v63  ;;  %v2618_v42 = vpack.c.bf16 %v1403_v2, %v1401_v41 }
 0x1ec   :  { %v1089_v40 = vmax.f32 %v819_v10, 0.0  ;;  %v822_v16 = vpop.f32.mrb[78].mxu1  ;;  %2597 = vmatpush1.bf16.msra.mxu0 %v2596_v27  ;;  %v1400_v10 = vld [vmem:[#allocation7 + $0x760] sm:$0xff] }
 0x1ed   :  { %v823_v43 = vadd.f32 %v822_v16, %v3242_v34  ;;  %v824_v13 = vpop.f32.mrb[79].mxu1  ;;  %2599 = vmatprep.subr.bf16.mxu0 %v2598_v6  ;;  %v1407_v16 = vld [vmem:[#allocation7 + $0x798] sm:$0xff] }
 0x1ee   :  { %v825_v23 = vadd.f32 %v824_v13, %v3246_v60  ;;  %1854 = vmatprep.mubr.f32.mxu0 %v1089_v40  ;;  %v1405_v40 = vld [vmem:[#allocation7 + $0x788] sm:$0xff] }
 0x1ef   :  { %1855 = vmatmul.mubr.f32.gmra.mrb[12].mxu0 %v1088_v20  ;;  %v1096_v52 = vmax.f32 %v823_v43, 0.0  ;;  %v2620_v43 = vpack.c.bf16 %v1402_v14, %v1400_v10  ;;  %v2622_v15 = vpack.c.bf16 %v1407_v16, %v1405_v40 }
 0x1f0   :  { %v1097_v51 = vmax.f32 %v825_v23, 0.0  ;;  %v828_v26 = vpop.f32.mrb[80].mxu1  ;;  %2601 = vmatpush1.bf16.msra.mxu0 %v2600_v61  ;;  %v1404_v23 = vld [vmem:[#allocation7 + $0x780] sm:$0xff] }
 0x1f1   :  { %v829_v57 = vadd.f32 %v828_v26, %v3242_v34  ;;  %v830_v9 = vpop.f32.mrb[81].mxu1  ;;  %2603 = vmatprep.subr.bf16.mxu0 %v2602_v21  ;;  %v1411_v26 = vld [vmem:[#allocation7 + $0x7b8] sm:$0xff] }
 0x1f2   :  { %v831_v59 = vadd.f32 %v830_v9, %v3246_v60  ;;  %1860 = vmatprep.mubr.f32.mxu0 %v1097_v51  ;;  %v1409_v51 = vld [vmem:[#allocation7 + $0x7a8] sm:$0xff] }
 0x1f3   :  { %1861 = vmatmul.mubr.f32.gmra.mrb[14].mxu0 %v1096_v52  ;;  %v1104_v36 = vmax.f32 %v829_v57, 0.0  ;;  %v2624_v57 = vpack.c.bf16 %v1406_v31, %v1404_v23  ;;  %v2626_v32 = vpack.c.bf16 %v1411_v26, %v1409_v51 }
 0x1f4   :  { %v1105_v48 = vmax.f32 %v831_v59, 0.0  ;;  %v834_v3 = vpop.f32.mrb[82].mxu1  ;;  %2605 = vmatpush1.bf16.msra.mxu0 %v2604_v28  ;;  %v1408_v59 = vld [vmem:[#allocation7 + $0x7a0] sm:$0xff] }
 0x1f5   :  { %v835_v1 = vadd.f32 %v834_v3, %v3242_v34  ;;  %v836_v55 = vpop.f32.mrb[83].mxu1  ;;  %2607 = vmatprep.subr.bf16.mxu0 %v2606_v29  ;;  %v1415_v3 = vld [vmem:[#allocation7 + $0x7d8] sm:$0xff] }
 0x1f6   :  { %v837_v45 = vadd.f32 %v836_v55, %v3246_v60  ;;  %1866 = vmatprep.mubr.f32.mxu0 %v1105_v48  ;;  %v1413_v48 = vld [vmem:[#allocation7 + $0x7c8] sm:$0xff] }
 0x1f7   :  { %1867 = vmatmul.mubr.f32.gmra.mrb[16].mxu0 %v1104_v36  ;;  %v1112_v56 = vmax.f32 %v835_v1, 0.0  ;;  %v2628_v1 = vpack.c.bf16 %v1410_v8, %v1408_v59  ;;  %v2630_v47 = vpack.c.bf16 %v1415_v3, %v1413_v48 }
 0x1f8   :  { %v1113_v50 = vmax.f32 %v837_v45, 0.0  ;;  %v840_v53 = vpop.f32.mrb[84].mxu1  ;;  %2609 = vmatpush1.bf16.msra.mxu0 %v2608_v35  ;;  %v378_v45 = vsub.s32 6, %v3144_v37 }
 0x1f9   :  { %v841_v62 = vadd.f32 %v840_v53, %v3242_v34  ;;  %v842_v33 = vpop.f32.mrb[85].mxu1  ;;  %2611 = vmatprep.subr.bf16.mxu0 %v2610_v49  ;;  %v382_v53 = vsub.s32 7, %v3144_v37 }
 0x1fa   :  { %v843_v25 = vadd.f32 %v842_v33, %v3246_v60  ;;  %1872 = vmatprep.mubr.f32.mxu0 %v1113_v50  ;;  %v3282_v41 = vrot.slane %v3239_v30, %v378_v45 }
 0x1fb   :  { %1873 = vmatmul.mubr.f32.gmra.mrb[18].mxu0 %v1112_v56  ;;  %v1120_v38 = vmax.f32 %v841_v62, 0.0  ;;  %v1419_v56 = vld [vmem:[#allocation7 + $0x7f8] sm:$0xff] }
 0x1fc   :  { %v1121_v27 = vmax.f32 %v843_v25, 0.0  ;;  %v846_v4 = vpop.f32.mrb[86].mxu1  ;;  %2613 = vmatpush1.bf16.msra.mxu0 %v2612_v17  ;;  %v1417_v17 = vld [vmem:[#allocation7 + $0x7e8] sm:$0xff] }
 0x1fd   :  { %v847_v6 = vadd.f32 %v846_v4, %v3242_v34  ;;  %v848_v7 = vpop.f32.mrb[87].mxu1  ;;  %2615 = vmatprep.subr.bf16.mxu0 %v2614_v19  ;;  %v2632_v19 = vpack.c.bf16 %v1414_v11, %v1412_v46  ;;  %v2634_v2 = vpack.c.bf16 %v1419_v56, %v1417_v17  ;;  %v1418_v4 = vld [vmem:[#allocation7 + $0x7f0] sm:$0xff] }
 0x1fe   :  { %v849_v58 = vadd.f32 %v848_v7, %v3246_v60  ;;  %1878 = vmatprep.mubr.f32.mxu0 %v1121_v27  ;;  %v1416_v27 = vld [vmem:[#allocation7 + $0x7e0] sm:$0xff] }
 0x1ff   :  { %1879 = vmatmul.mubr.f32.gmra.mrb[20].mxu0 %v1120_v38  ;;  %v1128_v13 = vmax.f32 %v847_v6, 0.0  ;;  %v3286_v38 = vrot.slane %v3239_v30, %v382_v53 }
 0x200   :  { %v1129_v61 = vmax.f32 %v849_v58, 0.0  ;;  %v852_v20 = vpop.f32.mrb[88].mxu1  ;;  %2617 = vmatpush1.bf16.msra.mxu0 %v2616_v5 }
 0x201   :  { %v853_v21 = vadd.f32 %v852_v20, %v3242_v34  ;;  %v854_v22 = vpop.f32.mrb[89].mxu1  ;;  %2619 = vmatprep.subr.bf16.mxu0 %v2618_v42  ;;  %v2636_v42 = vpack.c.bf16 %v1418_v4, %v1416_v27 }
 0x202   :  { %v855_v24 = vadd.f32 %v854_v22, %v3246_v60  ;;  %1884 = vmatprep.mubr.f32.mxu0 %v1129_v61 }
 0x203   :  { %1885 = vmatmul.mubr.f32.gmra.mrb[22].mxu0 %v1128_v13  ;;  %v1136_v9 = vmax.f32 %v853_v21, 0.0 }
 0x204   :  { %v1137_v28 = vmax.f32 %v855_v24, 0.0  ;;  %v858_v52 = vpop.f32.mrb[90].mxu1  ;;  %2621 = vmatpush1.bf16.msra.mxu0 %v2620_v43 }
 0x205   :  { %v859_v29 = vadd.f32 %v858_v52, %v3242_v34  ;;  %v860_v54 = vpop.f32.mrb[91].mxu1  ;;  %2623 = vmatprep.subr.bf16.mxu0 %v2622_v15 }
 0x206   :  { %v861_v12 = vadd.f32 %v860_v54, %v3246_v60  ;;  %1890 = vmatprep.mubr.f32.mxu0 %v1137_v28 }
 0x207   :  { %1891 = vmatmul.mubr.f32.gmra.mrb[24].mxu0 %v1136_v9  ;;  %v1144_v55 = vmax.f32 %v859_v29, 0.0 }
 0x208   :  { %v1145_v35 = vmax.f32 %v861_v12, 0.0  ;;  %v864_v36 = vpop.f32.mrb[92].mxu1  ;;  %2625 = vmatpush1.bf16.msra.mxu0 %v2624_v57 }
 0x209   :  { %v865_v49 = vadd.f32 %v864_v36, %v3242_v34  ;;  %v866_v39 = vpop.f32.mrb[93].mxu1  ;;  %2627 = vmatprep.subr.bf16.mxu0 %v2626_v32 }
 0x20a   :  { %v867_v50 = vadd.f32 %v866_v39, %v3246_v60  ;;  %1896 = vmatprep.mubr.f32.mxu0 %v1145_v35 }
 0x20b   :  { %1897 = vmatmul.mubr.f32.gmra.mrb[26].mxu0 %v1144_v55  ;;  %v1152_v63 = vmax.f32 %v865_v49, 0.0 }
 0x20c   :  { %v1153_v62 = vmax.f32 %v867_v50, 0.0  ;;  %v870_v33 = vpop.f32.mrb[94].mxu1  ;;  %2629 = vmatpush1.bf16.msra.mxu0 %v2628_v1 }
 0x20d   :  { %v871_v0 = vadd.f32 %v870_v33, %v3242_v34  ;;  %v872_v25 = vpop.f32.mrb[95].mxu1  ;;  %2631 = vmatprep.subr.bf16.mxu0 %v2630_v47 }
 0x20e   :  { %v873_v5 = vadd.f32 %v872_v25, %v3246_v60  ;;  %1902 = vmatprep.mubr.f32.mxu0 %v1153_v62 }
 0x20f   :  { %1903 = vmatmul.mubr.f32.gmra.mrb[28].mxu0 %v1152_v63  ;;  %v1160_v34 = vmax.f32 %v871_v0, 0.0 }
 0x210   :  { %v1161_v6 = vmax.f32 %v873_v5, 0.0  ;;  %v941_v7 = vpop.f32.mrb[96].mxu1  ;;  %2633 = vmatpush1.bf16.msra.mxu0 %v2632_v19 }
 0x211   :  { %v942_v10 = vadd.f32 %v941_v7, %v3282_v41  ;;  %v943_v14 = vpop.f32.mrb[97].mxu1  ;;  %2635 = vmatprep.subr.bf16.mxu0 %v2634_v2 }
 0x212   :  { %v944_v58 = vadd.f32 %v943_v14, %v3286_v38  ;;  %1908 = vmatprep.mubr.f32.mxu0 %v1161_v6 }
 0x213   :  { %1909 = vmatmul.mubr.f32.gmra.mrb[30].mxu0 %v1160_v34  ;;  %v1042_v16 = vmax.f32 %v942_v10, 0.0 }
 0x214   :  { %v1043_v40 = vmax.f32 %v944_v58, 0.0  ;;  %v947_v60 = vpop.f32.mrb[98].mxu1  ;;  %2637 = vmatpush1.bf16.msra.mxu0 %v2636_v42 }
 0x215   :  { %v948_v30 = vadd.f32 %v947_v60, %v3282_v41  ;;  %v949_v61 = vpop.f32.mrb[99].mxu1 }
 0x216   :  { %v950_v20 = vadd.f32 %v949_v61, %v3286_v38  ;;  %1979 = vmatprep.mubr.f32.mxu0 %v1043_v40 }
 0x217   :  { %1980 = vmatmul.mubr.f32.vlgmr.msra.gmra.mrb[0].mxu0 %v1042_v16  ;;  %v1050_v21 = vmax.f32 %v948_v30, 0.0 }
 0x218   :  { %v1051_v43 = vmax.f32 %v950_v20, 0.0  ;;  %v953_v13 = vpop.f32.mrb[100].mxu1 }
 0x219   :  { %v954_v22 = vadd.f32 %v953_v13, %v3282_v41  ;;  %v955_v15 = vpop.f32.mrb[101].mxu1 }
 0x21a   :  { %v956_v23 = vadd.f32 %v955_v15, %v3286_v38  ;;  %1985 = vmatprep.mubr.f32.mxu0 %v1051_v43 }
 0x21b   :  { %1986 = vmatmul.mubr.f32.gmra.mrb[2].mxu0 %v1050_v21  ;;  %v1058_v51 = vmax.f32 %v954_v22, 0.0 }
 0x21c   :  { %v1059_v31 = vmax.f32 %v956_v23, 0.0  ;;  %v959_v24 = vpop.f32.mrb[102].mxu1 }
 0x21d   :  { %v960_v26 = vadd.f32 %v959_v24, %v3282_v41  ;;  %v961_v28 = vpop.f32.mrb[103].mxu1 }
 0x21e   :  { %v962_v52 = vadd.f32 %v961_v28, %v3286_v38  ;;  %1991 = vmatprep.mubr.f32.mxu0 %v1059_v31 }
 0x21f   :  { %1992 = vmatmul.mubr.f32.gmra.mrb[4].mxu0 %v1058_v51  ;;  %v1066_v29 = vmax.f32 %v960_v26, 0.0 }
 0x220   :  { %v1067_v57 = vmax.f32 %v962_v52, 0.0  ;;  %v965_v9 = vpop.f32.mrb[104].mxu1 }
 0x221   :  { %v966_v54 = vadd.f32 %v965_v9, %v3282_v41  ;;  %v967_v32 = vpop.f32.mrb[105].mxu1 }
 0x222   :  { %v968_v59 = vadd.f32 %v967_v32, %v3286_v38  ;;  %1997 = vmatprep.mubr.f32.mxu0 %v1067_v57 }
 0x223   :  { %1998 = vmatmul.mubr.f32.gmra.mrb[6].mxu0 %v1066_v29  ;;  %v1074_v48 = vmax.f32 %v966_v54, 0.0 }
 0x224   :  { %v1075_v8 = vmax.f32 %v968_v59, 0.0  ;;  %v971_v12 = vpop.f32.mrb[106].mxu1 }
 0x225   :  { %v972_v3 = vadd.f32 %v971_v12, %v3282_v41  ;;  %v973_v35 = vpop.f32.mrb[107].mxu1 }
 0x226   :  { %v974_v36 = vadd.f32 %v973_v35, %v3286_v38  ;;  %2003 = vmatprep.mubr.f32.mxu0 %v1075_v8 }
 0x227   :  { %2004 = vmatmul.mubr.f32.gmra.mrb[8].mxu0 %v1074_v48  ;;  %v1082_v49 = vmax.f32 %v972_v3, 0.0 }
 0x228   :  { %v1083_v1 = vmax.f32 %v974_v36, 0.0  ;;  %v977_v55 = vpop.f32.mrb[108].mxu1 }
 0x229   :  { %v978_v39 = vadd.f32 %v977_v55, %v3282_v41  ;;  %v979_v47 = vpop.f32.mrb[109].mxu1 }
 0x22a   :  { %v980_v45 = vadd.f32 %v979_v47, %v3286_v38  ;;  %2009 = vmatprep.mubr.f32.mxu0 %v1083_v1 }
 0x22b   :  { %2010 = vmatmul.mubr.f32.gmra.mrb[10].mxu0 %v1082_v49  ;;  %v1090_v50 = vmax.f32 %v978_v39, 0.0  ;;  %v1420_v39 = vld [vmem:[%s3382_s4] sm:$0x3] }
 0x22c   :  { %v1091_v46 = vmax.f32 %v980_v45, 0.0  ;;  %v983_v11 = vpop.f32.mrb[110].mxu1  ;;  %v3325_v47 = vrot.slane %v1420_v39, %v354_v18 }
 0x22d   :  { %v984_v53 = vadd.f32 %v983_v11, %v3282_v41  ;;  %v985_v17 = vpop.f32.mrb[111].mxu1 }
 0x22e   :  { %v986_v56 = vadd.f32 %v985_v17, %v3286_v38  ;;  %2015 = vmatprep.mubr.f32.mxu0 %v1091_v46 }
 0x22f   :  { %2016 = vmatmul.mubr.f32.gmra.mrb[12].mxu0 %v1090_v50  ;;  %v1098_v19 = vmax.f32 %v984_v53, 0.0 }
 0x230   :  { %v1099_v62 = vmax.f32 %v986_v56, 0.0  ;;  %v989_v33 = vpop.f32.mrb[112].mxu1 }
 0x231   :  { %v990_v63 = vadd.f32 %v989_v33, %v3282_v41  ;;  %v991_v0 = vpop.f32.mrb[113].mxu1 }
 0x232   :  { %v992_v25 = vadd.f32 %v991_v0, %v3286_v38  ;;  %2021 = vmatprep.mubr.f32.mxu0 %v1099_v62 }
 0x233   :  { %2022 = vmatmul.mubr.f32.gmra.mrb[14].mxu0 %v1098_v19  ;;  %v1106_v4 = vmax.f32 %v990_v63, 0.0 }
 0x234   :  { %v1107_v2 = vmax.f32 %v992_v25, 0.0  ;;  %v995_v27 = vpop.f32.mrb[114].mxu1 }
 0x235   :  { %v996_v5 = vadd.f32 %v995_v27, %v3282_v41  ;;  %v997_v6 = vpop.f32.mrb[115].mxu1 }
 0x236   :  { %v998_v7 = vadd.f32 %v997_v6, %v3286_v38  ;;  %2027 = vmatprep.mubr.f32.mxu0 %v1107_v2 }
 0x237   :  { %2028 = vmatmul.mubr.f32.gmra.mrb[16].mxu0 %v1106_v4  ;;  %v1114_v10 = vmax.f32 %v996_v5, 0.0 }
 0x238   :  { %v1115_v42 = vmax.f32 %v998_v7, 0.0  ;;  %v1001_v34 = vpop.f32.mrb[116].mxu1 }
 0x239   :  { %v1002_v14 = vadd.f32 %v1001_v34, %v3282_v41  ;;  %v1003_v58 = vpop.f32.mrb[117].mxu1 }
 0x23a   :  { %v1004_v40 = vadd.f32 %v1003_v58, %v3286_v38  ;;  %2033 = vmatprep.mubr.f32.mxu0 %v1115_v42 }
 0x23b   :  { %2034 = vmatmul.mubr.f32.gmra.mrb[18].mxu0 %v1114_v10  ;;  %v1122_v30 = vmax.f32 %v1002_v14, 0.0 }
 0x23c   :  { %v1123_v60 = vmax.f32 %v1004_v40, 0.0  ;;  %v1007_v16 = vpop.f32.mrb[118].mxu1 }
 0x23d   :  { %v1008_v61 = vadd.f32 %v1007_v16, %v3282_v41  ;;  %v1009_v20 = vpop.f32.mrb[119].mxu1 }
 0x23e   :  { %v1010_v43 = vadd.f32 %v1009_v20, %v3286_v38  ;;  %2039 = vmatprep.mubr.f32.mxu0 %v1123_v60 }
 0x23f   :  { %2040 = vmatmul.mubr.f32.gmra.mrb[20].mxu0 %v1122_v30  ;;  %v1130_v22 = vmax.f32 %v1008_v61, 0.0 }
 0x240   :  { %v1131_v13 = vmax.f32 %v1010_v43, 0.0  ;;  %v1013_v21 = vpop.f32.mrb[120].mxu1 }
 0x241   :  { %v1014_v15 = vadd.f32 %v1013_v21, %v3282_v41  ;;  %v1015_v23 = vpop.f32.mrb[121].mxu1 }
 0x242   :  { %v1016_v31 = vadd.f32 %v1015_v23, %v3286_v38  ;;  %2045 = vmatprep.mubr.f32.mxu0 %v1131_v13 }
 0x243   :  { %2046 = vmatmul.mubr.f32.gmra.mrb[22].mxu0 %v1130_v22  ;;  %v1138_v26 = vmax.f32 %v1014_v15, 0.0 }
 0x244   :  { %v1139_v24 = vmax.f32 %v1016_v31, 0.0  ;;  %v1019_v51 = vpop.f32.mrb[122].mxu1 }
 0x245   :  { %v1020_v28 = vadd.f32 %v1019_v51, %v3282_v41  ;;  %v1021_v52 = vpop.f32.mrb[123].mxu1 }
 0x246   :  { %v1022_v57 = vadd.f32 %v1021_v52, %v3286_v38  ;;  %2051 = vmatprep.mubr.f32.mxu0 %v1139_v24 }
 0x247   :  { %2052 = vmatmul.mubr.f32.gmra.mrb[24].mxu0 %v1138_v26  ;;  %v1146_v54 = vmax.f32 %v1020_v28, 0.0 }
 0x248   :  { %v1147_v9 = vmax.f32 %v1022_v57, 0.0  ;;  %v1025_v29 = vpop.f32.mrb[124].mxu1 }
 0x249   :  { %v1026_v32 = vadd.f32 %v1025_v29, %v3282_v41  ;;  %v1027_v59 = vpop.f32.mrb[125].mxu1 }
 0x24a   :  { %v1028_v8 = vadd.f32 %v1027_v59, %v3286_v38  ;;  %2057 = vmatprep.mubr.f32.mxu0 %v1147_v9 }
 0x24b   :  { %2058 = vmatmul.mubr.f32.gmra.mrb[26].mxu0 %v1146_v54  ;;  %v1154_v3 = vmax.f32 %v1026_v32, 0.0 }
 0x24c   :  { %v1155_v12 = vmax.f32 %v1028_v8, 0.0  ;;  %v1031_v48 = vpop.f32.mrb[126].mxu1 }
 0x24d   :  { %v1032_v35 = vadd.f32 %v1031_v48, %v3282_v41  ;;  %v1033_v36 = vpop.f32.mrb[127].mxu1  ;;  %v3329_v41 = vrot.slane %v1420_v39, %v358_v44 }
 0x24e   :  { %v1034_v1 = vadd.f32 %v1033_v36, %v3286_v38  ;;  %2063 = vmatprep.mubr.f32.mxu0 %v1155_v12 }
 0x24f   :  { %2064 = vmatmul.mubr.f32.gmra.mrb[28].mxu0 %v1154_v3  ;;  %v1162_v49 = vmax.f32 %v1032_v35, 0.0 }
 0x250   :  { %v1163_v55 = vmax.f32 %v1034_v1, 0.0 }
 0x252   :  { %2069 = vmatprep.mubr.f32.mxu0 %v1163_v55 }
 0x253   :  { %2070 = vmatmul.mubr.f32.gmra.mrb[30].mxu0 %v1162_v49 }
 0x2ea   :  { %v1981_v45 = vpop.f32.mrb[0].mxu0 }
 0x2eb   :  { %v2638_v38 = vadd.f32 %v1981_v45, %v3325_v47  ;;  %v1983_v46 = vpop.f32.mrb[1].mxu0 }
 0x2ec   :  { %v2639_v11 = vadd.f32 %v1983_v46, %v3329_v41 }
 0x2ed   :  { %2076 = vst [vmem:[#allocation8] sm:$0xff] %v2638_v38 }
 0x2ee   :  { %2077 = vst [vmem:[#allocation8 + $0x8] sm:$0xff] %v2639_v11  ;;  %v1987_v50 = vpop.f32.mrb[2].mxu0 }
 0x2ef   :  { %v2640_v53 = vadd.f32 %v1987_v50, %v3325_v47  ;;  %v1989_v17 = vpop.f32.mrb[3].mxu0 }
 0x2f0   :  { %v2641_v56 = vadd.f32 %v1989_v17, %v3329_v41 }
 0x2f1   :  { %2078 = vst [vmem:[#allocation8 + $0x10] sm:$0xff] %v2640_v53 }
 0x2f2   :  { %2079 = vst [vmem:[#allocation8 + $0x18] sm:$0xff] %v2641_v56  ;;  %v1993_v18 = vpop.f32.mrb[4].mxu0 }
 0x2f3   :  { %v2642_v37 = vadd.f32 %v1993_v18, %v3325_v47  ;;  %v1995_v44 = vpop.f32.mrb[5].mxu0 }
 0x2f4   :  { %v2643_v62 = vadd.f32 %v1995_v44, %v3329_v41 }
 0x2f5   :  { %2080 = vst [vmem:[#allocation8 + $0x20] sm:$0xff] %v2642_v37 }
 0x2f6   :  { %2081 = vst [vmem:[#allocation8 + $0x28] sm:$0xff] %v2643_v62  ;;  %v1999_v33 = vpop.f32.mrb[6].mxu0 }
 0x2f7   :  { %v2644_v19 = vadd.f32 %v1999_v33, %v3325_v47  ;;  %v2001_v63 = vpop.f32.mrb[7].mxu0 }
 0x2f8   :  { %v2645_v0 = vadd.f32 %v2001_v63, %v3329_v41 }
 0x2f9   :  { %2082 = vst [vmem:[#allocation8 + $0x30] sm:$0xff] %v2644_v19 }
 0x2fa   :  { %2083 = vst [vmem:[#allocation8 + $0x38] sm:$0xff] %v2645_v0  ;;  %v2005_v25 = vpop.f32.mrb[8].mxu0 }
 0x2fb   :  { %v2646_v2 = vadd.f32 %v2005_v25, %v3325_v47  ;;  %v2007_v27 = vpop.f32.mrb[9].mxu0 }
 0x2fc   :  { %v2647_v4 = vadd.f32 %v2007_v27, %v3329_v41 }
 0x2fd   :  { %2084 = vst [vmem:[#allocation8 + $0x40] sm:$0xff] %v2646_v2 }
 0x2fe   :  { %2085 = vst [vmem:[#allocation8 + $0x48] sm:$0xff] %v2647_v4  ;;  %v2011_v5 = vpop.f32.mrb[10].mxu0 }
 0x2ff   :  { %v2648_v6 = vadd.f32 %v2011_v5, %v3325_v47  ;;  %v2013_v7 = vpop.f32.mrb[11].mxu0 }
 0x300   :  { %v2649_v42 = vadd.f32 %v2013_v7, %v3329_v41 }
 0x301   :  { %2086 = vst [vmem:[#allocation8 + $0x50] sm:$0xff] %v2648_v6 }
 0x302   :  { %2087 = vst [vmem:[#allocation8 + $0x58] sm:$0xff] %v2649_v42  ;;  %v2017_v34 = vpop.f32.mrb[12].mxu0 }
 0x303   :  { %v2650_v10 = vadd.f32 %v2017_v34, %v3325_v47  ;;  %v2019_v14 = vpop.f32.mrb[13].mxu0 }
 0x304   :  { %v2651_v58 = vadd.f32 %v2019_v14, %v3329_v41 }
 0x305   :  { %2088 = vst [vmem:[#allocation8 + $0x60] sm:$0xff] %v2650_v10 }
 0x306   :  { %2089 = vst [vmem:[#allocation8 + $0x68] sm:$0xff] %v2651_v58  ;;  %v2023_v40 = vpop.f32.mrb[14].mxu0 }
 0x307   :  { %v2652_v60 = vadd.f32 %v2023_v40, %v3325_v47  ;;  %v2025_v16 = vpop.f32.mrb[15].mxu0 }
 0x308   :  { %v2653_v30 = vadd.f32 %v2025_v16, %v3329_v41 }
 0x309   :  { %2090 = vst [vmem:[#allocation8 + $0x70] sm:$0xff] %v2652_v60 }
 0x30a   :  { %2091 = vst [vmem:[#allocation8 + $0x78] sm:$0xff] %v2653_v30  ;;  %v2029_v61 = vpop.f32.mrb[16].mxu0 }
 0x30b   :  { %v2654_v20 = vadd.f32 %v2029_v61, %v3325_v47  ;;  %v2031_v43 = vpop.f32.mrb[17].mxu0 }
 0x30c   :  { %v2655_v13 = vadd.f32 %v2031_v43, %v3329_v41 }
 0x30d   :  { %2092 = vst [vmem:[#allocation8 + $0x80] sm:$0xff] %v2654_v20 }
 0x30e   :  { %2093 = vst [vmem:[#allocation8 + $0x88] sm:$0xff] %v2655_v13  ;;  %v2035_v21 = vpop.f32.mrb[18].mxu0 }
 0x30f   :  { %v2656_v22 = vadd.f32 %v2035_v21, %v3325_v47  ;;  %v2037_v15 = vpop.f32.mrb[19].mxu0 }
 0x310   :  { %v2657_v23 = vadd.f32 %v2037_v15, %v3329_v41 }
 0x311   :  { %2094 = vst [vmem:[#allocation8 + $0x90] sm:$0xff] %v2656_v22 }
 0x312   :  { %2095 = vst [vmem:[#allocation8 + $0x98] sm:$0xff] %v2657_v23  ;;  %v2041_v31 = vpop.f32.mrb[20].mxu0 }
 0x313   :  { %v2658_v24 = vadd.f32 %v2041_v31, %v3325_v47  ;;  %v2043_v51 = vpop.f32.mrb[21].mxu0 }
 0x314   :  { %v2659_v26 = vadd.f32 %v2043_v51, %v3329_v41 }
 0x315   :  { %2096 = vst [vmem:[#allocation8 + $0xa0] sm:$0xff] %v2658_v24 }
 0x316   :  { %2097 = vst [vmem:[#allocation8 + $0xa8] sm:$0xff] %v2659_v26  ;;  %v2047_v28 = vpop.f32.mrb[22].mxu0 }
 0x317   :  { %v2660_v52 = vadd.f32 %v2047_v28, %v3325_v47  ;;  %v2049_v57 = vpop.f32.mrb[23].mxu0 }
 0x318   :  { %v2661_v9 = vadd.f32 %v2049_v57, %v3329_v41 }
 0x319   :  { %2098 = vst [vmem:[#allocation8 + $0xb0] sm:$0xff] %v2660_v52 }
 0x31a   :  { %2099 = vst [vmem:[#allocation8 + $0xb8] sm:$0xff] %v2661_v9  ;;  %v2053_v29 = vpop.f32.mrb[24].mxu0 }
 0x31b   :  { %v2662_v54 = vadd.f32 %v2053_v29, %v3325_v47  ;;  %v2055_v32 = vpop.f32.mrb[25].mxu0 }
 0x31c   :  { %v2663_v59 = vadd.f32 %v2055_v32, %v3329_v41 }
 0x31d   :  { %2100 = vst [vmem:[#allocation8 + $0xc0] sm:$0xff] %v2662_v54 }
 0x31e   :  { %2101 = vst [vmem:[#allocation8 + $0xc8] sm:$0xff] %v2663_v59  ;;  %v2059_v8 = vpop.f32.mrb[26].mxu0 }
 0x31f   :  { %v2664_v12 = vadd.f32 %v2059_v8, %v3325_v47  ;;  %v2061_v48 = vpop.f32.mrb[27].mxu0 }
 0x320   :  { %v2665_v3 = vadd.f32 %v2061_v48, %v3329_v41 }
 0x321   :  { %2102 = vst [vmem:[#allocation8 + $0xd0] sm:$0xff] %v2664_v12 }
 0x322   :  { %2103 = vst [vmem:[#allocation8 + $0xd8] sm:$0xff] %v2665_v3  ;;  %v2065_v35 = vpop.f32.mrb[28].mxu0 }
 0x323   :  { %v2666_v36 = vadd.f32 %v2065_v35, %v3325_v47  ;;  %v2067_v1 = vpop.f32.mrb[29].mxu0 }
 0x324   :  { %v2667_v55 = vadd.f32 %v2067_v1, %v3329_v41 }
 0x325   :  { %2104 = vst [vmem:[#allocation8 + $0xe0] sm:$0xff] %v2666_v36 }
 0x326   :  { %2105 = vst [vmem:[#allocation8 + $0xe8] sm:$0xff] %v2667_v55  ;;  %v2071_v49 = vpop.f32.mrb[30].mxu0 }
 0x327   :  { %v2668_v39 = vadd.f32 %v2071_v49, %v3325_v47  ;;  %v2073_v45 = vpop.f32.mrb[31].mxu0 }
 0x328   :  { %v2669_v38 = vadd.f32 %v2073_v45, %v3329_v41 }
 0x329   :  { %2106 = vst [vmem:[#allocation8 + $0xf0] sm:$0xff] %v2668_v39 }
 0x32a   :  { %2107 = vst [vmem:[#allocation8 + $0xf8] sm:$0xff] %v2669_v38 }
 0x32b   :  { %2112 = vsyncadd [#allocation4], 3584  ;;  %s2908_s4 = smov [#allocation8]  }
 0x32c   :  { %s2113_s11 = sshll.u32 %s2908_s4, 4  ;;  %s2114_s11 = int_to_ptr.vmem [resolvable:$true] %s2113_s11 }
 0x32d   :  { %s2873_s12 = scalar_lea.vmem %s2114_s11, 512  ;;  %s2877_s13 = scalar_lea.vmem %s2114_s11, 4096 }
 0x32e   :  { %p2874_p10 = scmp.ne.s32.totalorder %s2114_s11, %s2873_s12  ;;  %p2878_p11 = scmp.lt.s32.totalorder %s2114_s11, %s2114_s11 }
 0x32f   :  { %p2879_p12 = scmp.lt.s32.totalorder %s2877_s13, %s2873_s12 }
 0x331   :  { %p2880_p13 = por %p2879_p12, %p2878_p11 }
 0x333   :  { %p2881_p0 = pnand %p2880_p13, %p2874_p10 }
 0x335   :  { %2884 = shalt.err (!%p2881_p0)
}
 0x336   :  { %s2885_s16 = scalar_lea.hbm %s3383_s5, 512 }
 0x337   :  { %p2886_p1 = scmp.ne.s32.totalorder %s3383_s5, %s2885_s16  ;;  %p2889_p2 = scmp.lt.u32.totalorder %s2885_s16, %s3383_s5 }
 0x339   :  { %p2891_p3 = pnand %p2889_p2, %p2886_p1 }
 0x33b   :  { %2894 = shalt.err (!%p2891_p3)
}
 0x33c   :  { %2119 = dma.vmem_to_hbm [thread:$0]  %s2114_s11, 512, %s3383_s5, [#allocation4], %s2905_s17, %s2905_s17, %s2906_s18  }
 0x33d   :  { %2899 = dma.done.wait [#allocation4], 4096  }
 0x33e   :  { %2900 = vsyncadd [#allocation4], 4294963200 }
 0x33f   :  { %2123 = vsyncpa [#allocation3], 1 }
 0x340   :  { %2124 = vsyncpa [#allocation6], 1 }
 0x341   :  { %2125 = vsyncpa [#allocation4], 1 }

</bundles_post_ra>
